<compile_context>
chip_gen: v7x
topology: tpu7x:2x2x1
jax: 0.10.0
libtpu: 0.0.40
codegen_flags: <defaults>
</compile_context>

<pallas_src>
import jax
import jax.numpy as jnp
from jax.experimental import pallas as pl
from jax.experimental.pallas import tpu as pltpu


def lstm_kernel(x_ref, wih0_ref, whh0_ref, b0_ref, wcat_ref, bcat_ref,
                h0_ref, c0_ref, out_ref):
    # x_ref:    (S*BP, H)     time-major input, batch padded to BP rows (row = t*BP + b)
    # wih0_ref: (H, 4H)       layer-0 input->gates weights (pre-transposed)
    # whh0_ref: (H, 4H)       layer-0 hidden->gates weights (pre-transposed)
    # b0_ref:   (1, 4H)       layer-0 bias (b_ih + b_hh)
    # wcat_ref: (L-1, 2H, 4H) layers>0 stacked [W_ih^T ; W_hh^T]
    # bcat_ref: (L-1, 1, 4H)  layers>0 bias (b_ih + b_hh)
    # h0_ref:   (L, BP, H)    initial hidden states (padded)
    # c0_ref:   (L, BP, H)    initial cell states (padded)
    # out_ref:  (B, H)        h_n of last layer at final timestep (real rows only)
    L, BP, H = h0_ref.shape
    S = x_ref.shape[0] // BP
    B = out_ref.shape[0]

    def cell(gates, c_prev):
        # PyTorch gate order [i, f, g, o].
        # sigmoid(x) == 0.5 * (1 + tanh(0.5 * x)): one EUP push per activation
        # instead of exp + add + exact-divide on the serialized per-step chain.
        sig = 0.5 * (jnp.tanh(0.5 * gates) + 1.0)
        th = jnp.tanh(gates)
        i_g = sig[:, 0 * H:1 * H]
        f_g = sig[:, 1 * H:2 * H]
        g_g = th[:, 2 * H:3 * H]
        o_g = sig[:, 3 * H:4 * H]
        c_new = f_g * c_prev + i_g * g_g
        h_new = o_g * jnp.tanh(c_new)
        return h_new, c_new

    # ---- Layer 0 ----
    # Hoisted input projection: one (S*BP, H) @ (H, 4H) MXU op, off the
    # recurrence's critical path (x does not depend on the recurrence).
    wih0 = wih0_ref[...].astype(jnp.float32)
    whh0 = whh0_ref[...].astype(jnp.float32)
    b0 = b0_ref[...].astype(jnp.float32)
    gates_x = jnp.dot(x_ref[...].astype(jnp.float32), wih0,
                      preferred_element_type=jnp.float32) + b0          # (S*BP, 4H)

    h = h0_ref[0].astype(jnp.float32)                                   # (BP, H)
    c = c0_ref[0].astype(jnp.float32)
    h_seq = []
    for t in range(S):   # static -> fully unrolled; BP=8 keeps slices sublane-aligned
        gates = gates_x[t * BP:(t + 1) * BP, :] + jnp.dot(
            h, whh0, preferred_element_type=jnp.float32)                # (BP, 4H)
        h, c = cell(gates, c)
        h_seq.append(h)

    # ---- Layers 1..L-1 ----
    # Per-step fused projection: [h_{l-1,t} ; h_{l,t-1}] @ [W_ih^T ; W_hh^T] is a
    # single MXU push per step.  h_seq entries are SSA values (no VMEM scratch),
    # so layer l step t depends only on layer l-1 step t: the dependence DAG is
    # the S+L-1 wavefront, and the single-basic-block scheduler exploits it.
    for l in range(1, L):
        wcat = wcat_ref[l - 1].astype(jnp.float32)                      # (2H, 4H)
        bl = bcat_ref[l - 1].astype(jnp.float32)                        # (1, 4H)
        h = h0_ref[l].astype(jnp.float32)
        c = c0_ref[l].astype(jnp.float32)
        new_seq = []
        for t in range(S):
            inp = jnp.concatenate([h_seq[t], h], axis=1)                # (BP, 2H)
            gates = jnp.dot(inp, wcat, preferred_element_type=jnp.float32) + bl
            h, c = cell(gates, c)
            new_seq.append(h)
        h_seq = new_seq

    # Single store of the real batch rows of h_n[-1] (padding rows dropped).
    out_ref[...] = h[:B, :].astype(out_ref.dtype)


def prepare_lstm_params(w_ih, w_hh, b_ih, b_hh):
    """One-time weight re-layout (parameter-prep time, not per forward call)."""
    L, G, H = w_ih.shape            # G == 4*H
    wih0 = jnp.transpose(w_ih[0]).astype(jnp.float32)                   # (H, 4H)
    whh0 = jnp.transpose(w_hh[0]).astype(jnp.float32)                   # (H, 4H)
    b0 = (b_ih[0] + b_hh[0]).reshape(1, G).astype(jnp.float32)
    if L > 1:
        wcat = jnp.concatenate(
            [jnp.transpose(w_ih[1:], (0, 2, 1)),
             jnp.transpose(w_hh[1:], (0, 2, 1))], axis=1).astype(jnp.float32)  # (L-1, 2H, 4H)
        bcat = (b_ih[1:] + b_hh[1:]).reshape(L - 1, 1, G).astype(jnp.float32)
    else:
        wcat = jnp.zeros((1, 2 * H, G), jnp.float32)   # unused dummy for L == 1
        bcat = jnp.zeros((1, 1, G), jnp.float32)
    return {"wih0": wih0, "whh0": whh0, "b0": b0, "wcat": wcat, "bcat": bcat}


@jax.jit
def lstm_forward(x, params, h0, c0):
    """x: (B, S, H) batch-first, like the PyTorch module.  Returns h_n[-1]: (B, H)."""
    B, S, H = x.shape
    L = h0.shape[0]
    BP = max(8, -(-B // 8) * 8)               # pad batch to a full sublane group
    pad = BP - B

    x_tm = jnp.transpose(x, (1, 0, 2))                        # time-major (S, B, H)
    x_tm = jnp.pad(x_tm, ((0, 0), (0, pad), (0, 0)))          # (S, BP, H)
    x_flat = x_tm.reshape(S * BP, H)
    h0p = jnp.pad(h0, ((0, 0), (0, pad), (0, 0)))             # (L, BP, H)
    c0p = jnp.pad(c0, ((0, 0), (0, pad), (0, 0)))

    G = 4 * H
    flops = 2 * S * BP * H * G                # hoisted layer-0 input projection
    flops += 2 * S * BP * H * G               # layer-0 per-step h @ W_hh
    flops += 2 * max(L - 1, 0) * S * BP * (2 * H) * G
    transcendentals = L * S * (2 * BP * G + BP * H)
    bytes_accessed = 4 * (x_flat.size + params["wih0"].size + params["whh0"].size
                          + params["b0"].size + params["wcat"].size
                          + params["bcat"].size + h0p.size + c0p.size + B * H)

    vmem = pl.BlockSpec(memory_space=pltpu.MemorySpace.VMEM)
    return pl.pallas_call(
        lstm_kernel,
        out_shape=jax.ShapeDtypeStruct((B, H), x.dtype),
        in_specs=[vmem] * 8,
        out_specs=vmem,
        cost_estimate=pl.CostEstimate(flops=flops,
                                      transcendentals=transcendentals,
                                      bytes_accessed=bytes_accessed),
    )(x_flat, params["wih0"], params["whh0"], params["b0"],
      params["wcat"], params["bcat"], h0p, c0p)


def lstm_reference(x, w_ih, w_hh, b_ih, b_hh, h0, c0):
    """Pure-JAX reference with PyTorch LSTM semantics (gate order i,f,g,o)."""
    B, S, H = x.shape
    L = w_ih.shape[0]
    layer_in = x
    h_last = None
    for l in range(L):
        h = h0[l]
        c = c0[l]
        outs = []
        for t in range(S):
            gates = layer_in[:, t, :] @ w_ih[l].T + h @ w_hh[l].T + b_ih[l] + b_hh[l]
            i_g = jax.nn.sigmoid(gates[:, 0 * H:1 * H])
            f_g = jax.nn.sigmoid(gates[:, 1 * H:2 * H])
            g_g = jnp.tanh(gates[:, 2 * H:3 * H])
            o_g = jax.nn.sigmoid(gates[:, 3 * H:4 * H])
            c = f_g * c + i_g * g_g
            h = o_g * jnp.tanh(c)
            outs.append(h)
        layer_in = jnp.stack(outs, axis=1)
        h_last = h
    return h_last


def orthogonal_rows(key, rows, cols):
    # Mirrors torch.nn.init.orthogonal_ on a (rows, cols) tensor with rows <= cols
    # (semi-orthogonal: orthonormal rows).
    # TODO(synk): exact torch.manual_seed(1234) RNG stream is not reproducible in
    # JAX; init is deterministic via PRNGKey instead.
    a = jax.random.normal(key, (cols, rows), dtype=jnp.float32)
    q, r = jnp.linalg.qr(a)                       # q: (cols, rows), orthonormal columns
    d = jnp.diagonal(r)
    q = q * jnp.where(d >= 0, 1.0, -1.0)
    return q.T                                    # (rows, cols), orthonormal rows


if __name__ == "__main__":
    # hp.latentDim = hiddenDim = 32, hp.num_lstm_layers = 2
    B, S, H, L = 2, 8, 32, 2

    key = jax.random.PRNGKey(0)
    ks = jax.random.split(key, 7)
    scale = 1.0 / jnp.sqrt(jnp.float32(H))

    # PyTorch LSTM default init: U(-1/sqrt(hidden), 1/sqrt(hidden))
    w_ih = jax.random.uniform(ks[0], (L, 4 * H, H), minval=-scale, maxval=scale, dtype=jnp.float32)
    w_hh = jax.random.uniform(ks[1], (L, 4 * H, H), minval=-scale, maxval=scale, dtype=jnp.float32)
    b_ih = jax.random.uniform(ks[2], (L, 4 * H), minval=-scale, maxval=scale, dtype=jnp.float32)
    b_hh = jax.random.uniform(ks[3], (L, 4 * H), minval=-scale, maxval=scale, dtype=jnp.float32)

    # snapshot_Seq: (currentBatchSize, seqLen, hiddenDim)
    x = jax.random.normal(ks[4], (B, S, H), dtype=jnp.float32)

    # reset_hidden_states(): orthogonal init of (layers, batch, hidden)
    h0 = orthogonal_rows(ks[5], L, B * H).reshape(L, B, H)
    c0 = orthogonal_rows(ks[6], L, B * H).reshape(L, B, H)

    params = prepare_lstm_params(w_ih, w_hh, b_ih, b_hh)   # one-time re-layout
    out = lstm_forward(x, params, h0, c0)
    out = jax.block_until_ready(out)
    assert out.shape == (B, H), out.shape

    ref = lstm_reference(x, w_ih, w_hh, b_ih, b_hh, h0, c0)
    assert jnp.allclose(out, ref, atol=1e-5, rtol=1e-5), jnp.max(jnp.abs(out - ref))

    print("KERNEL_OK")
</pallas_src>

<mosaic_0001>
module attributes {stable_mosaic.version = 11 : i64} {
  func.func @lstm_kernel(%arg0: memref<64x32xf32, #tpu.memory_space<vmem>>, %arg1: memref<32x128xf32, #tpu.memory_space<vmem>>, %arg2: memref<32x128xf32, #tpu.memory_space<vmem>>, %arg3: memref<1x128xf32, #tpu.memory_space<vmem>>, %arg4: memref<1x64x128xf32, #tpu.memory_space<vmem>>, %arg5: memref<1x1x128xf32, #tpu.memory_space<vmem>>, %arg6: memref<2x8x32xf32, #tpu.memory_space<vmem>>, %arg7: memref<2x8x32xf32, #tpu.memory_space<vmem>>, %arg8: memref<2x32xf32, #tpu.memory_space<vmem>>) attributes {dimension_semantics = [], scalar_prefetch = 0 : i64, scratch_operands = 0 : i64, tpu.core_type = #tpu.core_type<tc>} {
    %c0 = arith.constant 0 : index
    %c0_0 = arith.constant 0 : index
    %0 = vector.load %arg1[%c0, %c0_0] : memref<32x128xf32, #tpu.memory_space<vmem>>, vector<32x128xf32>
    %c0_1 = arith.constant 0 : index
    %c0_2 = arith.constant 0 : index
    %1 = vector.load %arg2[%c0_1, %c0_2] : memref<32x128xf32, #tpu.memory_space<vmem>>, vector<32x128xf32>
    %c0_3 = arith.constant 0 : index
    %c0_4 = arith.constant 0 : index
    %2 = vector.load %arg3[%c0_3, %c0_4] : memref<1x128xf32, #tpu.memory_space<vmem>>, vector<1x128xf32>
    %c0_5 = arith.constant 0 : index
    %c0_6 = arith.constant 0 : index
    %3 = vector.load %arg0[%c0_5, %c0_6] : memref<64x32xf32, #tpu.memory_space<vmem>>, vector<64x32xf32>
    %cst = arith.constant dense<0.000000e+00> : vector<64x128xf32>
    %4 = tpu.matmul %3, %0, %cst {dimension_numbers = #tpu.dot_dimension_numbers<[1], [0], [0], [1], [0, 0, 1, 1], [], []>} : vector<64x32xf32>, vector<32x128xf32>, vector<64x128xf32> -> vector<64x128xf32>
    %5 = vector.broadcast %2 : vector<1x128xf32> to vector<64x128xf32>
    %6 = arith.addf %4, %5 : vector<64x128xf32>
    %c0_7 = arith.constant 0 : index
    %c0_8 = arith.constant 0 : index
    %c0_9 = arith.constant 0 : index
    %7 = vector.load %arg6[%c0_7, %c0_8, %c0_9] : memref<2x8x32xf32, #tpu.memory_space<vmem>>, vector<1x8x32xf32>
    %8 = vector.shape_cast %7 : vector<1x8x32xf32> to vector<8x32xf32>
    %c0_10 = arith.constant 0 : index
    %c0_11 = arith.constant 0 : index
    %c0_12 = arith.constant 0 : index
    %9 = vector.load %arg7[%c0_10, %c0_11, %c0_12] : memref<2x8x32xf32, #tpu.memory_space<vmem>>, vector<1x8x32xf32>
    %10 = vector.shape_cast %9 : vector<1x8x32xf32> to vector<8x32xf32>
    %11 = vector.extract_strided_slice %6 {offsets = [0, 0], sizes = [8, 128], strides = [1, 1]} : vector<64x128xf32> to vector<8x128xf32>
    %cst_13 = arith.constant dense<0.000000e+00> : vector<8x128xf32>
    %12 = tpu.matmul %8, %1, %cst_13 {dimension_numbers = #tpu.dot_dimension_numbers<[1], [0], [0], [1], [0, 0, 1, 1], [], []>} : vector<8x32xf32>, vector<32x128xf32>, vector<8x128xf32> -> vector<8x128xf32>
    %13 = arith.addf %11, %12 : vector<8x128xf32>
    %cst_14 = arith.constant 5.000000e-01 : f32
    %14 = vector.broadcast %cst_14 : f32 to vector<8x128xf32>
    %15 = arith.mulf %14, %13 : vector<8x128xf32>
    %16 = math.tanh %15 : vector<8x128xf32>
    %cst_15 = arith.constant 1.000000e+00 : f32
    %17 = vector.broadcast %cst_15 : f32 to vector<8x128xf32>
    %18 = arith.addf %16, %17 : vector<8x128xf32>
    %cst_16 = arith.constant 5.000000e-01 : f32
    %19 = vector.broadcast %cst_16 : f32 to vector<8x128xf32>
    %20 = arith.mulf %19, %18 : vector<8x128xf32>
    %21 = math.tanh %13 : vector<8x128xf32>
    %22 = vector.extract_strided_slice %20 {offsets = [0, 0], sizes = [8, 32], strides = [1, 1]} : vector<8x128xf32> to vector<8x32xf32>
    %23 = vector.extract_strided_slice %20 {offsets = [0, 32], sizes = [8, 32], strides = [1, 1]} : vector<8x128xf32> to vector<8x32xf32>
    %24 = vector.extract_strided_slice %21 {offsets = [0, 64], sizes = [8, 32], strides = [1, 1]} : vector<8x128xf32> to vector<8x32xf32>
    %25 = vector.extract_strided_slice %20 {offsets = [0, 96], sizes = [8, 32], strides = [1, 1]} : vector<8x128xf32> to vector<8x32xf32>
    %26 = arith.mulf %23, %10 : vector<8x32xf32>
    %27 = arith.mulf %22, %24 : vector<8x32xf32>
    %28 = arith.addf %26, %27 : vector<8x32xf32>
    %29 = math.tanh %28 : vector<8x32xf32>
    %30 = arith.mulf %25, %29 : vector<8x32xf32>
    %31 = vector.extract_strided_slice %6 {offsets = [8, 0], sizes = [8, 128], strides = [1, 1]} : vector<64x128xf32> to vector<8x128xf32>
    %cst_17 = arith.constant dense<0.000000e+00> : vector<8x128xf32>
    %32 = tpu.matmul %30, %1, %cst_17 {dimension_numbers = #tpu.dot_dimension_numbers<[1], [0], [0], [1], [0, 0, 1, 1], [], []>} : vector<8x32xf32>, vector<32x128xf32>, vector<8x128xf32> -> vector<8x128xf32>
    %33 = arith.addf %31, %32 : vector<8x128xf32>
    %cst_18 = arith.constant 5.000000e-01 : f32
    %34 = vector.broadcast %cst_18 : f32 to vector<8x128xf32>
    %35 = arith.mulf %34, %33 : vector<8x128xf32>
    %36 = math.tanh %35 : vector<8x128xf32>
    %cst_19 = arith.constant 1.000000e+00 : f32
    %37 = vector.broadcast %cst_19 : f32 to vector<8x128xf32>
    %38 = arith.addf %36, %37 : vector<8x128xf32>
    %cst_20 = arith.constant 5.000000e-01 : f32
    %39 = vector.broadcast %cst_20 : f32 to vector<8x128xf32>
    %40 = arith.mulf %39, %38 : vector<8x128xf32>
    %41 = math.tanh %33 : vector<8x128xf32>
    %42 = vector.extract_strided_slice %40 {offsets = [0, 0], sizes = [8, 32], strides = [1, 1]} : vector<8x128xf32> to vector<8x32xf32>
    %43 = vector.extract_strided_slice %40 {offsets = [0, 32], sizes = [8, 32], strides = [1, 1]} : vector<8x128xf32> to vector<8x32xf32>
    %44 = vector.extract_strided_slice %41 {offsets = [0, 64], sizes = [8, 32], strides = [1, 1]} : vector<8x128xf32> to vector<8x32xf32>
    %45 = vector.extract_strided_slice %40 {offsets = [0, 96], sizes = [8, 32], strides = [1, 1]} : vector<8x128xf32> to vector<8x32xf32>
    %46 = arith.mulf %43, %28 : vector<8x32xf32>
    %47 = arith.mulf %42, %44 : vector<8x32xf32>
    %48 = arith.addf %46, %47 : vector<8x32xf32>
    %49 = math.tanh %48 : vector<8x32xf32>
    %50 = arith.mulf %45, %49 : vector<8x32xf32>
    %51 = vector.extract_strided_slice %6 {offsets = [16, 0], sizes = [8, 128], strides = [1, 1]} : vector<64x128xf32> to vector<8x128xf32>
    %cst_21 = arith.constant dense<0.000000e+00> : vector<8x128xf32>
    %52 = tpu.matmul %50, %1, %cst_21 {dimension_numbers = #tpu.dot_dimension_numbers<[1], [0], [0], [1], [0, 0, 1, 1], [], []>} : vector<8x32xf32>, vector<32x128xf32>, vector<8x128xf32> -> vector<8x128xf32>
    %53 = arith.addf %51, %52 : vector<8x128xf32>
    %cst_22 = arith.constant 5.000000e-01 : f32
    %54 = vector.broadcast %cst_22 : f32 to vector<8x128xf32>
    %55 = arith.mulf %54, %53 : vector<8x128xf32>
    %56 = math.tanh %55 : vector<8x128xf32>
    %cst_23 = arith.constant 1.000000e+00 : f32
    %57 = vector.broadcast %cst_23 : f32 to vector<8x128xf32>
    %58 = arith.addf %56, %57 : vector<8x128xf32>
    %cst_24 = arith.constant 5.000000e-01 : f32
    %59 = vector.broadcast %cst_24 : f32 to vector<8x128xf32>
    %60 = arith.mulf %59, %58 : vector<8x128xf32>
    %61 = math.tanh %53 : vector<8x128xf32>
    %62 = vector.extract_strided_slice %60 {offsets = [0, 0], sizes = [8, 32], strides = [1, 1]} : vector<8x128xf32> to vector<8x32xf32>
    %63 = vector.extract_strided_slice %60 {offsets = [0, 32], sizes = [8, 32], strides = [1, 1]} : vector<8x128xf32> to vector<8x32xf32>
    %64 = vector.extract_strided_slice %61 {offsets = [0, 64], sizes = [8, 32], strides = [1, 1]} : vector<8x128xf32> to vector<8x32xf32>
    %65 = vector.extract_strided_slice %60 {offsets = [0, 96], sizes = [8, 32], strides = [1, 1]} : vector<8x128xf32> to vector<8x32xf32>
    %66 = arith.mulf %63, %48 : vector<8x32xf32>
    %67 = arith.mulf %62, %64 : vector<8x32xf32>
    %68 = arith.addf %66, %67 : vector<8x32xf32>
    %69 = math.tanh %68 : vector<8x32xf32>
    %70 = arith.mulf %65, %69 : vector<8x32xf32>
    %71 = vector.extract_strided_slice %6 {offsets = [24, 0], sizes = [8, 128], strides = [1, 1]} : vector<64x128xf32> to vector<8x128xf32>
    %cst_25 = arith.constant dense<0.000000e+00> : vector<8x128xf32>
    %72 = tpu.matmul %70, %1, %cst_25 {dimension_numbers = #tpu.dot_dimension_numbers<[1], [0], [0], [1], [0, 0, 1, 1], [], []>} : vector<8x32xf32>, vector<32x128xf32>, vector<8x128xf32> -> vector<8x128xf32>
    %73 = arith.addf %71, %72 : vector<8x128xf32>
    %cst_26 = arith.constant 5.000000e-01 : f32
    %74 = vector.broadcast %cst_26 : f32 to vector<8x128xf32>
    %75 = arith.mulf %74, %73 : vector<8x128xf32>
    %76 = math.tanh %75 : vector<8x128xf32>
    %cst_27 = arith.constant 1.000000e+00 : f32
    %77 = vector.broadcast %cst_27 : f32 to vector<8x128xf32>
    %78 = arith.addf %76, %77 : vector<8x128xf32>
    %cst_28 = arith.constant 5.000000e-01 : f32
    %79 = vector.broadcast %cst_28 : f32 to vector<8x128xf32>
    %80 = arith.mulf %79, %78 : vector<8x128xf32>
    %81 = math.tanh %73 : vector<8x128xf32>
    %82 = vector.extract_strided_slice %80 {offsets = [0, 0], sizes = [8, 32], strides = [1, 1]} : vector<8x128xf32> to vector<8x32xf32>
    %83 = vector.extract_strided_slice %80 {offsets = [0, 32], sizes = [8, 32], strides = [1, 1]} : vector<8x128xf32> to vector<8x32xf32>
    %84 = vector.extract_strided_slice %81 {offsets = [0, 64], sizes = [8, 32], strides = [1, 1]} : vector<8x128xf32> to vector<8x32xf32>
    %85 = vector.extract_strided_slice %80 {offsets = [0, 96], sizes = [8, 32], strides = [1, 1]} : vector<8x128xf32> to vector<8x32xf32>
    %86 = arith.mulf %83, %68 : vector<8x32xf32>
    %87 = arith.mulf %82, %84 : vector<8x32xf32>
    %88 = arith.addf %86, %87 : vector<8x32xf32>
    %89 = math.tanh %88 : vector<8x32xf32>
    %90 = arith.mulf %85, %89 : vector<8x32xf32>
    %91 = vector.extract_strided_slice %6 {offsets = [32, 0], sizes = [8, 128], strides = [1, 1]} : vector<64x128xf32> to vector<8x128xf32>
    %cst_29 = arith.constant dense<0.000000e+00> : vector<8x128xf32>
    %92 = tpu.matmul %90, %1, %cst_29 {dimension_numbers = #tpu.dot_dimension_numbers<[1], [0], [0], [1], [0, 0, 1, 1], [], []>} : vector<8x32xf32>, vector<32x128xf32>, vector<8x128xf32> -> vector<8x128xf32>
    %93 = arith.addf %91, %92 : vector<8x128xf32>
    %cst_30 = arith.constant 5.000000e-01 : f32
    %94 = vector.broadcast %cst_30 : f32 to vector<8x128xf32>
    %95 = arith.mulf %94, %93 : vector<8x128xf32>
    %96 = math.tanh %95 : vector<8x128xf32>
    %cst_31 = arith.constant 1.000000e+00 : f32
    %97 = vector.broadcast %cst_31 : f32 to vector<8x128xf32>
    %98 = arith.addf %96, %97 : vector<8x128xf32>
    %cst_32 = arith.constant 5.000000e-01 : f32
    %99 = vector.broadcast %cst_32 : f32 to vector<8x128xf32>
    %100 = arith.mulf %99, %98 : vector<8x128xf32>
    %101 = math.tanh %93 : vector<8x128xf32>
    %102 = vector.extract_strided_slice %100 {offsets = [0, 0], sizes = [8, 32], strides = [1, 1]} : vector<8x128xf32> to vector<8x32xf32>
    %103 = vector.extract_strided_slice %100 {offsets = [0, 32], sizes = [8, 32], strides = [1, 1]} : vector<8x128xf32> to vector<8x32xf32>
    %104 = vector.extract_strided_slice %101 {offsets = [0, 64], sizes = [8, 32], strides = [1, 1]} : vector<8x128xf32> to vector<8x32xf32>
    %105 = vector.extract_strided_slice %100 {offsets = [0, 96], sizes = [8, 32], strides = [1, 1]} : vector<8x128xf32> to vector<8x32xf32>
    %106 = arith.mulf %103, %88 : vector<8x32xf32>
    %107 = arith.mulf %102, %104 : vector<8x32xf32>
    %108 = arith.addf %106, %107 : vector<8x32xf32>
    %109 = math.tanh %108 : vector<8x32xf32>
    %110 = arith.mulf %105, %109 : vector<8x32xf32>
    %111 = vector.extract_strided_slice %6 {offsets = [40, 0], sizes = [8, 128], strides = [1, 1]} : vector<64x128xf32> to vector<8x128xf32>
    %cst_33 = arith.constant dense<0.000000e+00> : vector<8x128xf32>
    %112 = tpu.matmul %110, %1, %cst_33 {dimension_numbers = #tpu.dot_dimension_numbers<[1], [0], [0], [1], [0, 0, 1, 1], [], []>} : vector<8x32xf32>, vector<32x128xf32>, vector<8x128xf32> -> vector<8x128xf32>
    %113 = arith.addf %111, %112 : vector<8x128xf32>
    %cst_34 = arith.constant 5.000000e-01 : f32
    %114 = vector.broadcast %cst_34 : f32 to vector<8x128xf32>
    %115 = arith.mulf %114, %113 : vector<8x128xf32>
    %116 = math.tanh %115 : vector<8x128xf32>
    %cst_35 = arith.constant 1.000000e+00 : f32
    %117 = vector.broadcast %cst_35 : f32 to vector<8x128xf32>
    %118 = arith.addf %116, %117 : vector<8x128xf32>
    %cst_36 = arith.constant 5.000000e-01 : f32
    %119 = vector.broadcast %cst_36 : f32 to vector<8x128xf32>
    %120 = arith.mulf %119, %118 : vector<8x128xf32>
    %121 = math.tanh %113 : vector<8x128xf32>
    %122 = vector.extract_strided_slice %120 {offsets = [0, 0], sizes = [8, 32], strides = [1, 1]} : vector<8x128xf32> to vector<8x32xf32>
    %123 = vector.extract_strided_slice %120 {offsets = [0, 32], sizes = [8, 32], strides = [1, 1]} : vector<8x128xf32> to vector<8x32xf32>
    %124 = vector.extract_strided_slice %121 {offsets = [0, 64], sizes = [8, 32], strides = [1, 1]} : vector<8x128xf32> to vector<8x32xf32>
    %125 = vector.extract_strided_slice %120 {offsets = [0, 96], sizes = [8, 32], strides = [1, 1]} : vector<8x128xf32> to vector<8x32xf32>
    %126 = arith.mulf %123, %108 : vector<8x32xf32>
    %127 = arith.mulf %122, %124 : vector<8x32xf32>
    %128 = arith.addf %126, %127 : vector<8x32xf32>
    %129 = math.tanh %128 : vector<8x32xf32>
    %130 = arith.mulf %125, %129 : vector<8x32xf32>
    %131 = vector.extract_strided_slice %6 {offsets = [48, 0], sizes = [8, 128], strides = [1, 1]} : vector<64x128xf32> to vector<8x128xf32>
    %cst_37 = arith.constant dense<0.000000e+00> : vector<8x128xf32>
    %132 = tpu.matmul %130, %1, %cst_37 {dimension_numbers = #tpu.dot_dimension_numbers<[1], [0], [0], [1], [0, 0, 1, 1], [], []>} : vector<8x32xf32>, vector<32x128xf32>, vector<8x128xf32> -> vector<8x128xf32>
    %133 = arith.addf %131, %132 : vector<8x128xf32>
    %cst_38 = arith.constant 5.000000e-01 : f32
    %134 = vector.broadcast %cst_38 : f32 to vector<8x128xf32>
    %135 = arith.mulf %134, %133 : vector<8x128xf32>
    %136 = math.tanh %135 : vector<8x128xf32>
    %cst_39 = arith.constant 1.000000e+00 : f32
    %137 = vector.broadcast %cst_39 : f32 to vector<8x128xf32>
    %138 = arith.addf %136, %137 : vector<8x128xf32>
    %cst_40 = arith.constant 5.000000e-01 : f32
    %139 = vector.broadcast %cst_40 : f32 to vector<8x128xf32>
    %140 = arith.mulf %139, %138 : vector<8x128xf32>
    %141 = math.tanh %133 : vector<8x128xf32>
    %142 = vector.extract_strided_slice %140 {offsets = [0, 0], sizes = [8, 32], strides = [1, 1]} : vector<8x128xf32> to vector<8x32xf32>
    %143 = vector.extract_strided_slice %140 {offsets = [0, 32], sizes = [8, 32], strides = [1, 1]} : vector<8x128xf32> to vector<8x32xf32>
    %144 = vector.extract_strided_slice %141 {offsets = [0, 64], sizes = [8, 32], strides = [1, 1]} : vector<8x128xf32> to vector<8x32xf32>
    %145 = vector.extract_strided_slice %140 {offsets = [0, 96], sizes = [8, 32], strides = [1, 1]} : vector<8x128xf32> to vector<8x32xf32>
    %146 = arith.mulf %143, %128 : vector<8x32xf32>
    %147 = arith.mulf %142, %144 : vector<8x32xf32>
    %148 = arith.addf %146, %147 : vector<8x32xf32>
    %149 = math.tanh %148 : vector<8x32xf32>
    %150 = arith.mulf %145, %149 : vector<8x32xf32>
    %151 = vector.extract_strided_slice %6 {offsets = [56, 0], sizes = [8, 128], strides = [1, 1]} : vector<64x128xf32> to vector<8x128xf32>
    %cst_41 = arith.constant dense<0.000000e+00> : vector<8x128xf32>
    %152 = tpu.matmul %150, %1, %cst_41 {dimension_numbers = #tpu.dot_dimension_numbers<[1], [0], [0], [1], [0, 0, 1, 1], [], []>} : vector<8x32xf32>, vector<32x128xf32>, vector<8x128xf32> -> vector<8x128xf32>
    %153 = arith.addf %151, %152 : vector<8x128xf32>
    %cst_42 = arith.constant 5.000000e-01 : f32
    %154 = vector.broadcast %cst_42 : f32 to vector<8x128xf32>
    %155 = arith.mulf %154, %153 : vector<8x128xf32>
    %156 = math.tanh %155 : vector<8x128xf32>
    %cst_43 = arith.constant 1.000000e+00 : f32
    %157 = vector.broadcast %cst_43 : f32 to vector<8x128xf32>
    %158 = arith.addf %156, %157 : vector<8x128xf32>
    %cst_44 = arith.constant 5.000000e-01 : f32
    %159 = vector.broadcast %cst_44 : f32 to vector<8x128xf32>
    %160 = arith.mulf %159, %158 : vector<8x128xf32>
    %161 = math.tanh %153 : vector<8x128xf32>
    %162 = vector.extract_strided_slice %160 {offsets = [0, 0], sizes = [8, 32], strides = [1, 1]} : vector<8x128xf32> to vector<8x32xf32>
    %163 = vector.extract_strided_slice %160 {offsets = [0, 32], sizes = [8, 32], strides = [1, 1]} : vector<8x128xf32> to vector<8x32xf32>
    %164 = vector.extract_strided_slice %161 {offsets = [0, 64], sizes = [8, 32], strides = [1, 1]} : vector<8x128xf32> to vector<8x32xf32>
    %165 = vector.extract_strided_slice %160 {offsets = [0, 96], sizes = [8, 32], strides = [1, 1]} : vector<8x128xf32> to vector<8x32xf32>
    %166 = arith.mulf %163, %148 : vector<8x32xf32>
    %167 = arith.mulf %162, %164 : vector<8x32xf32>
    %168 = arith.addf %166, %167 : vector<8x32xf32>
    %169 = math.tanh %168 : vector<8x32xf32>
    %170 = arith.mulf %165, %169 : vector<8x32xf32>
    %c0_45 = arith.constant 0 : index
    %c0_46 = arith.constant 0 : index
    %c0_47 = arith.constant 0 : index
    %171 = vector.load %arg4[%c0_45, %c0_46, %c0_47] : memref<1x64x128xf32, #tpu.memory_space<vmem>>, vector<1x64x128xf32>
    %172 = vector.shape_cast %171 : vector<1x64x128xf32> to vector<64x128xf32>
    %c0_48 = arith.constant 0 : index
    %c0_49 = arith.constant 0 : index
    %c0_50 = arith.constant 0 : index
    %173 = vector.load %arg5[%c0_48, %c0_49, %c0_50] : memref<1x1x128xf32, #tpu.memory_space<vmem>>, vector<1x1x128xf32>
    %174 = vector.shape_cast %173 : vector<1x1x128xf32> to vector<1x128xf32>
    %c1 = arith.constant 1 : index
    %c0_51 = arith.constant 0 : index
    %c0_52 = arith.constant 0 : index
    %175 = vector.load %arg6[%c1, %c0_51, %c0_52] : memref<2x8x32xf32, #tpu.memory_space<vmem>>, vector<1x8x32xf32>
    %176 = vector.shape_cast %175 : vector<1x8x32xf32> to vector<8x32xf32>
    %c1_53 = arith.constant 1 : index
    %c0_54 = arith.constant 0 : index
    %c0_55 = arith.constant 0 : index
    %177 = vector.load %arg7[%c1_53, %c0_54, %c0_55] : memref<2x8x32xf32, #tpu.memory_space<vmem>>, vector<1x8x32xf32>
    %178 = vector.shape_cast %177 : vector<1x8x32xf32> to vector<8x32xf32>
    %179 = tpu.concatenate %30, %176 in 1 : vector<8x32xf32>, vector<8x32xf32> -> vector<8x64xf32>
    %cst_56 = arith.constant dense<0.000000e+00> : vector<8x128xf32>
    %180 = tpu.matmul %179, %172, %cst_56 {dimension_numbers = #tpu.dot_dimension_numbers<[1], [0], [0], [1], [0, 0, 1, 1], [], []>} : vector<8x64xf32>, vector<64x128xf32>, vector<8x128xf32> -> vector<8x128xf32>
    %181 = vector.broadcast %174 : vector<1x128xf32> to vector<8x128xf32>
    %182 = arith.addf %180, %181 : vector<8x128xf32>
    %cst_57 = arith.constant 5.000000e-01 : f32
    %183 = vector.broadcast %cst_57 : f32 to vector<8x128xf32>
    %184 = arith.mulf %183, %182 : vector<8x128xf32>
    %185 = math.tanh %184 : vector<8x128xf32>
    %cst_58 = arith.constant 1.000000e+00 : f32
    %186 = vector.broadcast %cst_58 : f32 to vector<8x128xf32>
    %187 = arith.addf %185, %186 : vector<8x128xf32>
    %cst_59 = arith.constant 5.000000e-01 : f32
    %188 = vector.broadcast %cst_59 : f32 to vector<8x128xf32>
    %189 = arith.mulf %188, %187 : vector<8x128xf32>
    %190 = math.tanh %182 : vector<8x128xf32>
    %191 = vector.extract_strided_slice %189 {offsets = [0, 0], sizes = [8, 32], strides = [1, 1]} : vector<8x128xf32> to vector<8x32xf32>
    %192 = vector.extract_strided_slice %189 {offsets = [0, 32], sizes = [8, 32], strides = [1, 1]} : vector<8x128xf32> to vector<8x32xf32>
    %193 = vector.extract_strided_slice %190 {offsets = [0, 64], sizes = [8, 32], strides = [1, 1]} : vector<8x128xf32> to vector<8x32xf32>
    %194 = vector.extract_strided_slice %189 {offsets = [0, 96], sizes = [8, 32], strides = [1, 1]} : vector<8x128xf32> to vector<8x32xf32>
    %195 = arith.mulf %192, %178 : vector<8x32xf32>
    %196 = arith.mulf %191, %193 : vector<8x32xf32>
    %197 = arith.addf %195, %196 : vector<8x32xf32>
    %198 = math.tanh %197 : vector<8x32xf32>
    %199 = arith.mulf %194, %198 : vector<8x32xf32>
    %200 = tpu.concatenate %50, %199 in 1 : vector<8x32xf32>, vector<8x32xf32> -> vector<8x64xf32>
    %cst_60 = arith.constant dense<0.000000e+00> : vector<8x128xf32>
    %201 = tpu.matmul %200, %172, %cst_60 {dimension_numbers = #tpu.dot_dimension_numbers<[1], [0], [0], [1], [0, 0, 1, 1], [], []>} : vector<8x64xf32>, vector<64x128xf32>, vector<8x128xf32> -> vector<8x128xf32>
    %202 = vector.broadcast %174 : vector<1x128xf32> to vector<8x128xf32>
    %203 = arith.addf %201, %202 : vector<8x128xf32>
    %cst_61 = arith.constant 5.000000e-01 : f32
    %204 = vector.broadcast %cst_61 : f32 to vector<8x128xf32>
    %205 = arith.mulf %204, %203 : vector<8x128xf32>
    %206 = math.tanh %205 : vector<8x128xf32>
    %cst_62 = arith.constant 1.000000e+00 : f32
    %207 = vector.broadcast %cst_62 : f32 to vector<8x128xf32>
    %208 = arith.addf %206, %207 : vector<8x128xf32>
    %cst_63 = arith.constant 5.000000e-01 : f32
    %209 = vector.broadcast %cst_63 : f32 to vector<8x128xf32>
    %210 = arith.mulf %209, %208 : vector<8x128xf32>
    %211 = math.tanh %203 : vector<8x128xf32>
    %212 = vector.extract_strided_slice %210 {offsets = [0, 0], sizes = [8, 32], strides = [1, 1]} : vector<8x128xf32> to vector<8x32xf32>
    %213 = vector.extract_strided_slice %210 {offsets = [0, 32], sizes = [8, 32], strides = [1, 1]} : vector<8x128xf32> to vector<8x32xf32>
    %214 = vector.extract_strided_slice %211 {offsets = [0, 64], sizes = [8, 32], strides = [1, 1]} : vector<8x128xf32> to vector<8x32xf32>
    %215 = vector.extract_strided_slice %210 {offsets = [0, 96], sizes = [8, 32], strides = [1, 1]} : vector<8x128xf32> to vector<8x32xf32>
    %216 = arith.mulf %213, %197 : vector<8x32xf32>
    %217 = arith.mulf %212, %214 : vector<8x32xf32>
    %218 = arith.addf %216, %217 : vector<8x32xf32>
    %219 = math.tanh %218 : vector<8x32xf32>
    %220 = arith.mulf %215, %219 : vector<8x32xf32>
    %221 = tpu.concatenate %70, %220 in 1 : vector<8x32xf32>, vector<8x32xf32> -> vector<8x64xf32>
    %cst_64 = arith.constant dense<0.000000e+00> : vector<8x128xf32>
    %222 = tpu.matmul %221, %172, %cst_64 {dimension_numbers = #tpu.dot_dimension_numbers<[1], [0], [0], [1], [0, 0, 1, 1], [], []>} : vector<8x64xf32>, vector<64x128xf32>, vector<8x128xf32> -> vector<8x128xf32>
    %223 = vector.broadcast %174 : vector<1x128xf32> to vector<8x128xf32>
    %224 = arith.addf %222, %223 : vector<8x128xf32>
    %cst_65 = arith.constant 5.000000e-01 : f32
    %225 = vector.broadcast %cst_65 : f32 to vector<8x128xf32>
    %226 = arith.mulf %225, %224 : vector<8x128xf32>
    %227 = math.tanh %226 : vector<8x128xf32>
    %cst_66 = arith.constant 1.000000e+00 : f32
    %228 = vector.broadcast %cst_66 : f32 to vector<8x128xf32>
    %229 = arith.addf %227, %228 : vector<8x128xf32>
    %cst_67 = arith.constant 5.000000e-01 : f32
    %230 = vector.broadcast %cst_67 : f32 to vector<8x128xf32>
    %231 = arith.mulf %230, %229 : vector<8x128xf32>
    %232 = math.tanh %224 : vector<8x128xf32>
    %233 = vector.extract_strided_slice %231 {offsets = [0, 0], sizes = [8, 32], strides = [1, 1]} : vector<8x128xf32> to vector<8x32xf32>
    %234 = vector.extract_strided_slice %231 {offsets = [0, 32], sizes = [8, 32], strides = [1, 1]} : vector<8x128xf32> to vector<8x32xf32>
    %235 = vector.extract_strided_slice %232 {offsets = [0, 64], sizes = [8, 32], strides = [1, 1]} : vector<8x128xf32> to vector<8x32xf32>
    %236 = vector.extract_strided_slice %231 {offsets = [0, 96], sizes = [8, 32], strides = [1, 1]} : vector<8x128xf32> to vector<8x32xf32>
    %237 = arith.mulf %234, %218 : vector<8x32xf32>
    %238 = arith.mulf %233, %235 : vector<8x32xf32>
    %239 = arith.addf %237, %238 : vector<8x32xf32>
    %240 = math.tanh %239 : vector<8x32xf32>
    %241 = arith.mulf %236, %240 : vector<8x32xf32>
    %242 = tpu.concatenate %90, %241 in 1 : vector<8x32xf32>, vector<8x32xf32> -> vector<8x64xf32>
    %cst_68 = arith.constant dense<0.000000e+00> : vector<8x128xf32>
    %243 = tpu.matmul %242, %172, %cst_68 {dimension_numbers = #tpu.dot_dimension_numbers<[1], [0], [0], [1], [0, 0, 1, 1], [], []>} : vector<8x64xf32>, vector<64x128xf32>, vector<8x128xf32> -> vector<8x128xf32>
    %244 = vector.broadcast %174 : vector<1x128xf32> to vector<8x128xf32>
    %245 = arith.addf %243, %244 : vector<8x128xf32>
    %cst_69 = arith.constant 5.000000e-01 : f32
    %246 = vector.broadcast %cst_69 : f32 to vector<8x128xf32>
    %247 = arith.mulf %246, %245 : vector<8x128xf32>
    %248 = math.tanh %247 : vector<8x128xf32>
    %cst_70 = arith.constant 1.000000e+00 : f32
    %249 = vector.broadcast %cst_70 : f32 to vector<8x128xf32>
    %250 = arith.addf %248, %249 : vector<8x128xf32>
    %cst_71 = arith.constant 5.000000e-01 : f32
    %251 = vector.broadcast %cst_71 : f32 to vector<8x128xf32>
    %252 = arith.mulf %251, %250 : vector<8x128xf32>
    %253 = math.tanh %245 : vector<8x128xf32>
    %254 = vector.extract_strided_slice %252 {offsets = [0, 0], sizes = [8, 32], strides = [1, 1]} : vector<8x128xf32> to vector<8x32xf32>
    %255 = vector.extract_strided_slice %252 {offsets = [0, 32], sizes = [8, 32], strides = [1, 1]} : vector<8x128xf32> to vector<8x32xf32>
    %256 = vector.extract_strided_slice %253 {offsets = [0, 64], sizes = [8, 32], strides = [1, 1]} : vector<8x128xf32> to vector<8x32xf32>
    %257 = vector.extract_strided_slice %252 {offsets = [0, 96], sizes = [8, 32], strides = [1, 1]} : vector<8x128xf32> to vector<8x32xf32>
    %258 = arith.mulf %255, %239 : vector<8x32xf32>
    %259 = arith.mulf %254, %256 : vector<8x32xf32>
    %260 = arith.addf %258, %259 : vector<8x32xf32>
    %261 = math.tanh %260 : vector<8x32xf32>
    %262 = arith.mulf %257, %261 : vector<8x32xf32>
    %263 = tpu.concatenate %110, %262 in 1 : vector<8x32xf32>, vector<8x32xf32> -> vector<8x64xf32>
    %cst_72 = arith.constant dense<0.000000e+00> : vector<8x128xf32>
    %264 = tpu.matmul %263, %172, %cst_72 {dimension_numbers = #tpu.dot_dimension_numbers<[1], [0], [0], [1], [0, 0, 1, 1], [], []>} : vector<8x64xf32>, vector<64x128xf32>, vector<8x128xf32> -> vector<8x128xf32>
    %265 = vector.broadcast %174 : vector<1x128xf32> to vector<8x128xf32>
    %266 = arith.addf %264, %265 : vector<8x128xf32>
    %cst_73 = arith.constant 5.000000e-01 : f32
    %267 = vector.broadcast %cst_73 : f32 to vector<8x128xf32>
    %268 = arith.mulf %267, %266 : vector<8x128xf32>
    %269 = math.tanh %268 : vector<8x128xf32>
    %cst_74 = arith.constant 1.000000e+00 : f32
    %270 = vector.broadcast %cst_74 : f32 to vector<8x128xf32>
    %271 = arith.addf %269, %270 : vector<8x128xf32>
    %cst_75 = arith.constant 5.000000e-01 : f32
    %272 = vector.broadcast %cst_75 : f32 to vector<8x128xf32>
    %273 = arith.mulf %272, %271 : vector<8x128xf32>
    %274 = math.tanh %266 : vector<8x128xf32>
    %275 = vector.extract_strided_slice %273 {offsets = [0, 0], sizes = [8, 32], strides = [1, 1]} : vector<8x128xf32> to vector<8x32xf32>
    %276 = vector.extract_strided_slice %273 {offsets = [0, 32], sizes = [8, 32], strides = [1, 1]} : vector<8x128xf32> to vector<8x32xf32>
    %277 = vector.extract_strided_slice %274 {offsets = [0, 64], sizes = [8, 32], strides = [1, 1]} : vector<8x128xf32> to vector<8x32xf32>
    %278 = vector.extract_strided_slice %273 {offsets = [0, 96], sizes = [8, 32], strides = [1, 1]} : vector<8x128xf32> to vector<8x32xf32>
    %279 = arith.mulf %276, %260 : vector<8x32xf32>
    %280 = arith.mulf %275, %277 : vector<8x32xf32>
    %281 = arith.addf %279, %280 : vector<8x32xf32>
    %282 = math.tanh %281 : vector<8x32xf32>
    %283 = arith.mulf %278, %282 : vector<8x32xf32>
    %284 = tpu.concatenate %130, %283 in 1 : vector<8x32xf32>, vector<8x32xf32> -> vector<8x64xf32>
    %cst_76 = arith.constant dense<0.000000e+00> : vector<8x128xf32>
    %285 = tpu.matmul %284, %172, %cst_76 {dimension_numbers = #tpu.dot_dimension_numbers<[1], [0], [0], [1], [0, 0, 1, 1], [], []>} : vector<8x64xf32>, vector<64x128xf32>, vector<8x128xf32> -> vector<8x128xf32>
    %286 = vector.broadcast %174 : vector<1x128xf32> to vector<8x128xf32>
    %287 = arith.addf %285, %286 : vector<8x128xf32>
    %cst_77 = arith.constant 5.000000e-01 : f32
    %288 = vector.broadcast %cst_77 : f32 to vector<8x128xf32>
    %289 = arith.mulf %288, %287 : vector<8x128xf32>
    %290 = math.tanh %289 : vector<8x128xf32>
    %cst_78 = arith.constant 1.000000e+00 : f32
    %291 = vector.broadcast %cst_78 : f32 to vector<8x128xf32>
    %292 = arith.addf %290, %291 : vector<8x128xf32>
    %cst_79 = arith.constant 5.000000e-01 : f32
    %293 = vector.broadcast %cst_79 : f32 to vector<8x128xf32>
    %294 = arith.mulf %293, %292 : vector<8x128xf32>
    %295 = math.tanh %287 : vector<8x128xf32>
    %296 = vector.extract_strided_slice %294 {offsets = [0, 0], sizes = [8, 32], strides = [1, 1]} : vector<8x128xf32> to vector<8x32xf32>
    %297 = vector.extract_strided_slice %294 {offsets = [0, 32], sizes = [8, 32], strides = [1, 1]} : vector<8x128xf32> to vector<8x32xf32>
    %298 = vector.extract_strided_slice %295 {offsets = [0, 64], sizes = [8, 32], strides = [1, 1]} : vector<8x128xf32> to vector<8x32xf32>
    %299 = vector.extract_strided_slice %294 {offsets = [0, 96], sizes = [8, 32], strides = [1, 1]} : vector<8x128xf32> to vector<8x32xf32>
    %300 = arith.mulf %297, %281 : vector<8x32xf32>
    %301 = arith.mulf %296, %298 : vector<8x32xf32>
    %302 = arith.addf %300, %301 : vector<8x32xf32>
    %303 = math.tanh %302 : vector<8x32xf32>
    %304 = arith.mulf %299, %303 : vector<8x32xf32>
    %305 = tpu.concatenate %150, %304 in 1 : vector<8x32xf32>, vector<8x32xf32> -> vector<8x64xf32>
    %cst_80 = arith.constant dense<0.000000e+00> : vector<8x128xf32>
    %306 = tpu.matmul %305, %172, %cst_80 {dimension_numbers = #tpu.dot_dimension_numbers<[1], [0], [0], [1], [0, 0, 1, 1], [], []>} : vector<8x64xf32>, vector<64x128xf32>, vector<8x128xf32> -> vector<8x128xf32>
    %307 = vector.broadcast %174 : vector<1x128xf32> to vector<8x128xf32>
    %308 = arith.addf %306, %307 : vector<8x128xf32>
    %cst_81 = arith.constant 5.000000e-01 : f32
    %309 = vector.broadcast %cst_81 : f32 to vector<8x128xf32>
    %310 = arith.mulf %309, %308 : vector<8x128xf32>
    %311 = math.tanh %310 : vector<8x128xf32>
    %cst_82 = arith.constant 1.000000e+00 : f32
    %312 = vector.broadcast %cst_82 : f32 to vector<8x128xf32>
    %313 = arith.addf %311, %312 : vector<8x128xf32>
    %cst_83 = arith.constant 5.000000e-01 : f32
    %314 = vector.broadcast %cst_83 : f32 to vector<8x128xf32>
    %315 = arith.mulf %314, %313 : vector<8x128xf32>
    %316 = math.tanh %308 : vector<8x128xf32>
    %317 = vector.extract_strided_slice %315 {offsets = [0, 0], sizes = [8, 32], strides = [1, 1]} : vector<8x128xf32> to vector<8x32xf32>
    %318 = vector.extract_strided_slice %315 {offsets = [0, 32], sizes = [8, 32], strides = [1, 1]} : vector<8x128xf32> to vector<8x32xf32>
    %319 = vector.extract_strided_slice %316 {offsets = [0, 64], sizes = [8, 32], strides = [1, 1]} : vector<8x128xf32> to vector<8x32xf32>
    %320 = vector.extract_strided_slice %315 {offsets = [0, 96], sizes = [8, 32], strides = [1, 1]} : vector<8x128xf32> to vector<8x32xf32>
    %321 = arith.mulf %318, %302 : vector<8x32xf32>
    %322 = arith.mulf %317, %319 : vector<8x32xf32>
    %323 = arith.addf %321, %322 : vector<8x32xf32>
    %324 = math.tanh %323 : vector<8x32xf32>
    %325 = arith.mulf %320, %324 : vector<8x32xf32>
    %326 = tpu.concatenate %170, %325 in 1 : vector<8x32xf32>, vector<8x32xf32> -> vector<8x64xf32>
    %cst_84 = arith.constant dense<0.000000e+00> : vector<8x128xf32>
    %327 = tpu.matmul %326, %172, %cst_84 {dimension_numbers = #tpu.dot_dimension_numbers<[1], [0], [0], [1], [0, 0, 1, 1], [], []>} : vector<8x64xf32>, vector<64x128xf32>, vector<8x128xf32> -> vector<8x128xf32>
    %328 = vector.broadcast %174 : vector<1x128xf32> to vector<8x128xf32>
    %329 = arith.addf %327, %328 : vector<8x128xf32>
    %cst_85 = arith.constant 5.000000e-01 : f32
    %330 = vector.broadcast %cst_85 : f32 to vector<8x128xf32>
    %331 = arith.mulf %330, %329 : vector<8x128xf32>
    %332 = math.tanh %331 : vector<8x128xf32>
    %cst_86 = arith.constant 1.000000e+00 : f32
    %333 = vector.broadcast %cst_86 : f32 to vector<8x128xf32>
    %334 = arith.addf %332, %333 : vector<8x128xf32>
    %cst_87 = arith.constant 5.000000e-01 : f32
    %335 = vector.broadcast %cst_87 : f32 to vector<8x128xf32>
    %336 = arith.mulf %335, %334 : vector<8x128xf32>
    %337 = math.tanh %329 : vector<8x128xf32>
    %338 = vector.extract_strided_slice %336 {offsets = [0, 0], sizes = [8, 32], strides = [1, 1]} : vector<8x128xf32> to vector<8x32xf32>
    %339 = vector.extract_strided_slice %336 {offsets = [0, 32], sizes = [8, 32], strides = [1, 1]} : vector<8x128xf32> to vector<8x32xf32>
    %340 = vector.extract_strided_slice %337 {offsets = [0, 64], sizes = [8, 32], strides = [1, 1]} : vector<8x128xf32> to vector<8x32xf32>
    %341 = vector.extract_strided_slice %336 {offsets = [0, 96], sizes = [8, 32], strides = [1, 1]} : vector<8x128xf32> to vector<8x32xf32>
    %342 = arith.mulf %339, %323 : vector<8x32xf32>
    %343 = arith.mulf %338, %340 : vector<8x32xf32>
    %344 = arith.addf %342, %343 : vector<8x32xf32>
    %345 = math.tanh %344 : vector<8x32xf32>
    %346 = arith.mulf %341, %345 : vector<8x32xf32>
    %347 = vector.extract_strided_slice %346 {offsets = [0, 0], sizes = [2, 32], strides = [1, 1]} : vector<8x32xf32> to vector<2x32xf32>
    %c0_88 = arith.constant 0 : index
    %c0_89 = arith.constant 0 : index
    %348 = vector.load %arg8[%c0_88, %c0_89] : memref<2x32xf32, #tpu.memory_space<vmem>>, vector<2x32xf32>
    tpu.vector_store %arg8[%c0_88, %c0_89], %347 {strides = array<i32>} : memref<2x32xf32, #tpu.memory_space<vmem>>, vector<2x32xf32>,
    return
  }
}

</mosaic_0001>

<bundles_post_ra>
// kernel: lstm_forward.1
= control target key start
LH: loop header
LB: loop body
LE: loop exit
PB: predicated region body
PF: predicated region fallthrough
CT: control target
= control target key end

     0   :  { %vm53_vm0 = vcmask 261120   ;;  %v2516_v4 = vmov 0.0|0.0   ;;  %vm2517_vm1 = vmmov 0   ;;  %v2518_v13 = vmov 0.0   ;;  %s2980_s0 = inlined_call_operand.vmem [shape: f32[64,32], index: 0, kind: input, shape index: {}]   ;;  %s2981_s1 = inlined_call_operand.vmem [shape: f32[32,128], index: 1, kind: input, shape index: {}]   ;;  %s2982_s2 = inlined_call_operand.vmem [shape: f32[32,128], index: 2, kind: input, shape index: {}]   ;;  %s2983_s3 = inlined_call_operand.vmem [shape: f32[1,128], index: 3, kind: input, shape index: {}]   ;;  %s2984_s4 = inlined_call_operand.vmem [shape: f32[1,64,128], index: 4, kind: input, shape index: {}]   ;;  %s2985_s5 = inlined_call_operand.vmem [shape: f32[1,1,128], index: 5, kind: input, shape index: {}]   ;;  %s2986_s6 = inlined_call_operand.vmem [shape: f32[2,8,32], index: 6, kind: input, shape index: {}]   ;;  %s2987_s7 = inlined_call_operand.vmem [shape: f32[2,8,32], index: 7, kind: input, shape index: {}]   ;;  %s2988_s8 = inlined_call_operand.hbm [shape: f32[2,32], index: 8, kind: output, shape index: {}]  }
   0x1   :  { %v30_v0 = vld [vmem:[%s2981_s1] sm:$0xff]  ;;  %v31_v1 = vld [vmem:[%s2981_s1 + $0x8] sm:$0xff]  ;;  %2246 = vmatprep.subr.bf16.mxu1 %v2516_v4  ;;  %v32_v6 = vld [vmem:[%s2981_s1 + $0x10] sm:$0xff]  ;;  %2006 = vmatprep.mubr.msk.f32.mxu1 %vm2517_vm1, %v2518_v13 }
   0x2   :  { %v34_v2 = vld [vmem:[%s2982_s2] sm:$0xff]  ;;  %v2238_v3 = vpack.c.bf16 %v31_v1, %v30_v0  ;;  %v35_v5 = vld [vmem:[%s2982_s2 + $0x8] sm:$0xff]  ;;  %v33_v7 = vld [vmem:[%s2981_s1 + $0x18] sm:$0xff] }
   0x3   :  { %v2586_v8 = vpack.c.bf16 %v35_v5, %v34_v2  ;;  %v2242_v9 = vpack.c.bf16 %v33_v7, %v32_v6  ;;  %v39_v10 = vld [vmem:[%s2980_s0] sm:$0xff]  ;;  %v36_v11 = vld [vmem:[%s2982_s2 + $0x10] sm:$0xff]  ;;  %v37_v12 = vld [vmem:[%s2982_s2 + $0x18] sm:$0xff] }
   0x4   :  { %2239 = vmatprep.subr.bf16.mxu0 %v2238_v3  ;;  %1986 = vmatprep.mubr.msk.f32.mxu0 %vm53_vm0, %v39_v10 }
   0x5   :  { %13 = vsyncpa [#allocation3], 0  ;;  %2241 = vmatpush3.bf16.msra.mxu0 %v2238_v3  ;;  %2248 = vmatpush3.bf16.msra.mxu1 %v2586_v8  ;;  %v2601_v14 = vpack.c.bf16 %v37_v12, %v36_v11  ;;  %v40_v15 = vld [vmem:[%s2980_s0 + $0x8] sm:$0xff]  ;;  %v183_v16 = vld [vmem:[%s2986_s6] sm:$0xff]  ;;  %s2519_s27 = smov 64   ;;  %s2520_s30 = smov 32  }
   0x6   :  { %2243 = vmatprep.subr.bf16.mxu0 %v2242_v9  ;;  %2249 = vmatprep.subr.bf16.mxu1 %v2516_v4  ;;  %v2628_v17 = vld [vmem:[%s2983_s3] ss:$0 sm:$0xff]  ;;  %v41_v54 = vld [vmem:[%s2980_s0 + $0x10] sm:$0xff]  ;;  %v42_v55 = vld [vmem:[%s2980_s0 + $0x18] sm:$0xff]  ;;  %vm996_vm2 = vcmask 523264   ;;  %vm1810_vm3 = vcmask 254976  }
   0x7   :  { %v184_v25 = vld [vmem:[%s2987_s7] sm:$0xff]  ;;  %v44_v57 = vld [vmem:[%s2980_s0 + $0x28] sm:$0xff]  ;;  %v45_v58 = vld [vmem:[%s2980_s0 + $0x30] sm:$0xff] }
   0x8   :  { %v43_v56 = vld [vmem:[%s2980_s0 + $0x20] sm:$0xff]  ;;  %v46_v59 = vld [vmem:[%s2980_s0 + $0x38] sm:$0xff] }
   0x9   :  { %2245 = vmatpush3.bf16.msra.mxu0 %v2242_v9  ;;  %2251 = vmatpush3.bf16.msra.mxu1 %v2601_v14 }
   0xa   :  { %2252 = vmatprep.subr.bf16.mxu1 %v2516_v4  ;;  %2258 = vmatprep.subr.bf16.mxu0 %v2516_v4 }
   0xc   :  { %1987 = vmatmul.mubr.msk.f32.vlgmr.msra.gmra.mrb[0].mxu0 %vm53_vm0, %v40_v15  ;;  %2007 = vmatmul.mubr.msk.f32.vlgmr.msra.gmra.mrb[0].mxu1 %vm53_vm0, %v183_v16 }
   0xd   :  { %2254 = vmatpush3.bf16.msra.mxu1 %v2586_v8  ;;  %2017 = vmatprep.mubr.msk.f32.mxu1 %vm2517_vm1, %v2518_v13 }
   0xe   :  { %2255 = vmatprep.subr.bf16.mxu1 %v2516_v4  ;;  %2260 = vmatpush3.bf16.msra.mxu0 %v2586_v8 }
   0xf   :  { %2261 = vmatprep.subr.bf16.mxu0 %v2516_v4  ;;  %1989 = vmatprep.mubr.msk.f32.mxu0 %vm53_vm0, %v41_v54 }
  0x10   :  { %1990 = vmatmul.mubr.msk.f32.gmra.mrb[2].mxu0 %vm53_vm0, %v42_v55 }
  0x11   :  { %2257 = vmatpush3.bf16.msra.mxu1 %v2601_v14  ;;  %1992 = vmatprep.mubr.msk.f32.mxu0 %vm53_vm0, %v43_v56 }
  0x12   :  { %2263 = vmatpush3.bf16.msra.mxu0 %v2601_v14  ;;  %2264 = vmatprep.subr.bf16.mxu1 %v2516_v4 }
  0x13   :  { %2270 = vmatprep.subr.bf16.mxu0 %v2516_v4 }
  0x14   :  { %1993 = vmatmul.mubr.msk.f32.gmra.mrb[4].mxu0 %vm53_vm0, %v44_v57 }
  0x15   :  { %1995 = vmatprep.mubr.msk.f32.mxu0 %vm53_vm0, %v45_v58 }
  0x18   :  { %1996 = vmatmul.mubr.msk.f32.gmra.mrb[6].mxu0 %vm53_vm0, %v46_v59 }
  0x19   :  { %2028 = vmatprep.mubr.msk.f32.mxu0 %vm2517_vm1, %v2518_v13 }
  0xdf   :  { %v1988_v18 = vpop.f32.mrb[0].mxu0  ;;  %v254_v19 = vpop.f32.mrb[0].mxu1 }
  0xe0   :  { %v144_v20 = vpop.f32.mrb[1].mxu0  ;;  %v2008_v21 = vpop.f32.mrb[1].mxu1  ;;  %v150_v40 = vadd.f32 %v1988_v18, %v2628_v17 }
  0xe1   :  { %v145_v22 = vadd.f32 %v2628_v17, %v144_v20 }
  0xe3   :  { %v258_v23 = vadd.f32 %v254_v19, %v145_v22  ;;  %v1991_v63 = vpop.f32.mrb[2].mxu0 }
  0xe4   :  { %v154_v0 = vpop.f32.mrb[3].mxu0 }
  0xe5   :  { %2396 = vtanh.f32 %v258_v23  ;;  %v259_v26 = vmul.f32 0.5, %v258_v23  ;;  %v155_v7 = vadd.f32 %v2628_v17, %v154_v0 }
  0xe7   :  { %2398 = vtanh.f32 %v259_v26  ;;  %v2680_v1 = vpop.f32.mrb[4].mxu0 }
  0xe8   :  { %v2682_v2 = vpop.f32.mrb[5].mxu0 }
  0xeb   :  { %v2684_v3 = vpop.f32.mrb[6].mxu0 }
  0xec   :  { %v2686_v5 = vpop.f32.mrb[7].mxu0 }
  0xef   :  { %v2397_v24 = vpop.eup %2396 }
  0xf0   :  { %270 = vrot.lane.b32.xlu0 %v2397_v24, %s2519_s27 }
  0xf1   :  { %v2399_v27 = vpop.eup %2398 }
  0xf2   :  { %v261_v28 = vadd.f32 1.0, %v2399_v27 }
  0xf4   :  { %265 = vrot.lane.b32.xlu0 %v184_v25, %s2520_s30  ;;  %v262_v29 = vmul.f32 0.5, %v261_v28 }
 0x162   :  { %v271_v30 = vpop.permute.xlu0 %270 }
 0x163   :  { %v273_v31 = vmul.f32 %v271_v30, %v262_v29 }
 0x165   :  { %275 = vrot.lane.b32.xlu1 %v273_v31, %s2520_s30 }
 0x166   :  { %v266_v32 = vpop.permute.xlu0 %265 }
 0x167   :  { %v268_v33 = vmul.f32 %v266_v32, %v262_v29 }
 0x1d7   :  { %v276_v34 = vpop.permute.xlu1 %275 }
 0x1d8   :  { %v278_v35 = vadd.f32 %v276_v34, %v268_v33 }
 0x1da   :  { %2400 = vtanh.f32 %v278_v35 }
 0x1e4   :  { %v2401_v36 = vpop.eup %2400 }
 0x1e5   :  { %281 = vrot.lane.b32.xlu1 %v2401_v36, %s2519_s27 }
 0x257   :  { %v282_v37 = vpop.permute.xlu1 %281 }
 0x258   :  { %v284_v38 = vmul.f32 %v282_v37, %v262_v29  ;;  %v160_v29 = vadd.f32 %v1991_v63, %v2628_v17 }
 0x25a   :  { %286 = vrot.lane.b32.xlu0 %v284_v38, %s2520_s30 }
 0x2cc   :  { %v2639_v39 = vpop.permute.xlu0 %286 }
 0x2cd   :  { %2018 = vmatmul.mubr.msk.f32.vlgmr.msra.gmra.mrb[2].mxu1 %vm53_vm0, %v2639_v39 }
 0x2ce   :  { %2266 = vmatpush3.bf16.msra.mxu1 %v2586_v8  ;;  %2039 = vmatprep.mubr.msk.f32.mxu1 %vm2517_vm1, %v2518_v13 }
 0x2cf   :  { %2267 = vmatprep.subr.bf16.mxu1 %v2516_v4 }
 0x2d2   :  { %2269 = vmatpush3.bf16.msra.mxu1 %v2601_v14 }
 0x2d3   :  { %2276 = vmatprep.subr.bf16.mxu1 %v2516_v4 }
 0x3a0   :  { %v356_v41 = vpop.f32.mrb[2].mxu1 }
 0x3a1   :  { %v360_v42 = vadd.f32 %v356_v41, %v150_v40  ;;  %v2019_v43 = vpop.f32.mrb[3].mxu1 }
 0x3a3   :  { %2402 = vtanh.f32 %v360_v42  ;;  %v361_v45 = vmul.f32 0.5, %v360_v42 }
 0x3a5   :  { %2404 = vtanh.f32 %v361_v45 }
 0x3ad   :  { %v2403_v44 = vpop.eup %2402 }
 0x3ae   :  { %368 = vrot.lane.b32.xlu1 %v2403_v44, %s2519_s27 }
 0x3af   :  { %v2405_v46 = vpop.eup %2404 }
 0x3b0   :  { %v363_v47 = vadd.f32 1.0, %v2405_v46 }
 0x3b2   :  { %v364_v48 = vmul.f32 0.5, %v363_v47 }
 0x3b4   :  { %v366_v51 = vmul.f32 %v364_v48, %v278_v35 }
 0x420   :  { %v369_v49 = vpop.permute.xlu1 %368 }
 0x421   :  { %v371_v50 = vmul.f32 %v369_v49, %v364_v48 }
 0x423   :  { %373 = vrot.lane.b32.xlu0 %v371_v50, %s2520_s30 }
 0x495   :  { %v374_v52 = vpop.permute.xlu0 %373 }
 0x496   :  { %v376_v53 = vadd.f32 %v374_v52, %v366_v51 }
 0x498   :  { %2406 = vtanh.f32 %v376_v53 }
 0x4a2   :  { %v2407_v60 = vpop.eup %2406 }
 0x4a3   :  { %379 = vrot.lane.b32.xlu1 %v2407_v60, %s2519_s27 }
 0x515   :  { %v380_v61 = vpop.permute.xlu1 %379 }
 0x516   :  { %v382_v62 = vmul.f32 %v380_v61, %v364_v48  ;;  %v165_v48 = vadd.f32 %v2628_v17, %v2682_v2 }
 0x518   :  { %384 = vrot.lane.b32.xlu0 %v382_v62, %s2520_s30 }
 0x58a   :  { %v2688_v6 = vpop.permute.xlu0 %384 }
 0x58b   :  { %2029 = vmatmul.mubr.msk.f32.vlgmr.msra.gmra.mrb[8].mxu0 %vm53_vm0, %v2688_v6 }
 0x58c   :  { %2272 = vmatpush3.bf16.msra.mxu0 %v2586_v8  ;;  %2050 = vmatprep.mubr.msk.f32.mxu0 %vm2517_vm1, %v2518_v13 }
 0x58d   :  { %2273 = vmatprep.subr.bf16.mxu0 %v2516_v4 }
 0x590   :  { %2275 = vmatpush3.bf16.msra.mxu0 %v2601_v14 }
 0x591   :  { %2282 = vmatprep.subr.bf16.mxu0 %v2516_v4 }
 0x65e   :  { %v454_v9 = vpop.f32.mrb[8].mxu0 }
 0x65f   :  { %v458_v10 = vadd.f32 %v454_v9, %v155_v7  ;;  %v2030_v11 = vpop.f32.mrb[9].mxu0  ;;  %v170_v7 = vadd.f32 %v2680_v1, %v2628_v17 }
 0x661   :  { %2408 = vtanh.f32 %v458_v10  ;;  %v459_v15 = vmul.f32 0.5, %v458_v10 }
 0x663   :  { %2410 = vtanh.f32 %v459_v15 }
 0x66b   :  { %v2409_v12 = vpop.eup %2408 }
 0x66c   :  { %466 = vrot.lane.b32.xlu1 %v2409_v12, %s2519_s27 }
 0x66d   :  { %v2411_v16 = vpop.eup %2410 }
 0x66e   :  { %v461_v18 = vadd.f32 1.0, %v2411_v16 }
 0x670   :  { %v462_v19 = vmul.f32 0.5, %v461_v18 }
 0x672   :  { %v464_v22 = vmul.f32 %v462_v19, %v376_v53 }
 0x6de   :  { %v467_v20 = vpop.permute.xlu1 %466 }
 0x6df   :  { %v469_v21 = vmul.f32 %v467_v20, %v462_v19 }
 0x6e1   :  { %471 = vrot.lane.b32.xlu0 %v469_v21, %s2520_s30 }
 0x753   :  { %v472_v23 = vpop.permute.xlu0 %471 }
 0x754   :  { %v474_v24 = vadd.f32 %v472_v23, %v464_v22  ;;  %v1843_v23 = vld [vmem:[%s2986_s6 + $0x8] sm:$0xff] }
 0x756   :  { %2412 = vtanh.f32 %v474_v24 }
 0x760   :  { %v2413_v25 = vpop.eup %2412 }
 0x761   :  { %477 = vrot.lane.b32.xlu1 %v2413_v25, %s2519_s27 }
 0x7d3   :  { %v478_v26 = vpop.permute.xlu1 %477 }
 0x7d4   :  { %v480_v27 = vmul.f32 %v478_v26, %v462_v19  ;;  %v971_v26 = vld [vmem:[%s2984_s4] sm:$0xff] }
 0x7d6   :  { %482 = vrot.lane.b32.xlu0 %v480_v27, %s2520_s30  ;;  %v972_v27 = vld [vmem:[%s2984_s4 + $0x8] sm:$0xff] }
 0x848   :  { %v2703_v28 = vpop.permute.xlu0 %482 }
 0x849   :  { %2040 = vmatmul.mubr.msk.f32.vlgmr.msra.gmra.mrb[4].mxu1 %vm53_vm0, %v2703_v28 }
 0x84a   :  { %2278 = vmatpush3.bf16.msra.mxu1 %v2586_v8  ;;  %2061 = vmatprep.mubr.msk.f32.mxu1 %vm2517_vm1, %v2518_v13 }
 0x84b   :  { %2279 = vmatprep.subr.bf16.mxu1 %v2516_v4 }
 0x84e   :  { %2281 = vmatpush3.bf16.msra.mxu1 %v2601_v14 }
 0x84f   :  { %2288 = vmatprep.subr.bf16.mxu1 %v2516_v4 }
 0x91c   :  { %v552_v30 = vpop.f32.mrb[4].mxu1 }
 0x91d   :  { %v556_v31 = vadd.f32 %v552_v30, %v160_v29  ;;  %v2041_v32 = vpop.f32.mrb[5].mxu1  ;;  %v2763_v29 = vpack.c.bf16 %v972_v27, %v971_v26  ;;  %v973_v30 = vld [vmem:[%s2984_s4 + $0x10] sm:$0xff] }
 0x91f   :  { %2414 = vtanh.f32 %v556_v31  ;;  %v557_v34 = vmul.f32 0.5, %v556_v31  ;;  %v974_v31 = vld [vmem:[%s2984_s4 + $0x18] sm:$0xff] }
 0x921   :  { %2416 = vtanh.f32 %v557_v34  ;;  %v975_v34 = vld [vmem:[%s2984_s4 + $0x20] sm:$0xff] }
 0x929   :  { %v2415_v33 = vpop.eup %2414 }
 0x92a   :  { %564 = vrot.lane.b32.xlu1 %v2415_v33, %s2519_s27  ;;  %v2776_v33 = vpack.c.bf16 %v974_v31, %v973_v30 }
 0x92b   :  { %v2417_v35 = vpop.eup %2416 }
 0x92c   :  { %v559_v36 = vadd.f32 1.0, %v2417_v35  ;;  %v976_v35 = vld [vmem:[%s2984_s4 + $0x28] sm:$0xff] }
 0x92e   :  { %v560_v37 = vmul.f32 0.5, %v559_v36  ;;  %v2788_v36 = vpack.c.bf16 %v976_v35, %v975_v34 }
 0x930   :  { %v562_v41 = vmul.f32 %v560_v37, %v474_v24 }
 0x99c   :  { %v565_v38 = vpop.permute.xlu1 %564 }
 0x99d   :  { %v567_v40 = vmul.f32 %v565_v38, %v560_v37  ;;  %v978_v38 = vld [vmem:[%s2984_s4 + $0x38] sm:$0xff] }
 0x99f   :  { %569 = vrot.lane.b32.xlu0 %v567_v40, %s2520_s30 }
 0xa11   :  { %v570_v42 = vpop.permute.xlu0 %569 }
 0xa12   :  { %v572_v43 = vadd.f32 %v570_v42, %v562_v41 }
 0xa14   :  { %2418 = vtanh.f32 %v572_v43 }
 0xa1e   :  { %v2419_v44 = vpop.eup %2418 }
 0xa1f   :  { %575 = vrot.lane.b32.xlu1 %v2419_v44, %s2519_s27 }
 0xa91   :  { %v576_v45 = vpop.permute.xlu1 %575 }
 0xa92   :  { %v578_v46 = vmul.f32 %v576_v45, %v560_v37  ;;  %v977_v37 = vld [vmem:[%s2984_s4 + $0x30] sm:$0xff] }
 0xa93   :  { %v2798_v40 = vpack.c.bf16 %v978_v38, %v977_v37 }
 0xa94   :  { %580 = vrot.lane.b32.xlu0 %v578_v46, %s2520_s30 }
 0xb06   :  { %v2718_v47 = vpop.permute.xlu0 %580 }
 0xb07   :  { %2051 = vmatmul.mubr.msk.f32.vlgmr.msra.gmra.mrb[10].mxu0 %vm53_vm0, %v2718_v47 }
 0xb08   :  { %2284 = vmatpush3.bf16.msra.mxu0 %v2586_v8  ;;  %2072 = vmatprep.mubr.msk.f32.mxu0 %vm2517_vm1, %v2518_v13 }
 0xb09   :  { %2285 = vmatprep.subr.bf16.mxu0 %v2516_v4 }
 0xb0c   :  { %2287 = vmatpush3.bf16.msra.mxu0 %v2601_v14 }
 0xb0d   :  { %2294 = vmatprep.subr.bf16.mxu0 %v2516_v4 }
 0xbda   :  { %v650_v49 = vpop.f32.mrb[10].mxu0 }
 0xbdb   :  { %v654_v50 = vadd.f32 %v650_v49, %v165_v48  ;;  %v2052_v51 = vpop.f32.mrb[11].mxu0  ;;  %v2822_v48 = vld [vmem:[%s2985_s5] ss:$0 sm:$0xff]  ;;  %s2521_s5 = smov [#allocation2]  }
 0xbdd   :  { %2420 = vtanh.f32 %v654_v50  ;;  %v655_v53 = vmul.f32 0.5, %v654_v50 }
 0xbdf   :  { %2422 = vtanh.f32 %v655_v53 }
 0xbe7   :  { %v2421_v52 = vpop.eup %2420 }
 0xbe8   :  { %662 = vrot.lane.b32.xlu1 %v2421_v52, %s2519_s27 }
 0xbe9   :  { %v2423_v54 = vpop.eup %2422 }
 0xbea   :  { %v657_v55 = vadd.f32 1.0, %v2423_v54 }
 0xbec   :  { %v658_v56 = vmul.f32 0.5, %v657_v55 }
 0xbee   :  { %v660_v59 = vmul.f32 %v658_v56, %v572_v43 }
 0xc5a   :  { %v663_v57 = vpop.permute.xlu1 %662 }
 0xc5b   :  { %v665_v58 = vmul.f32 %v663_v57, %v658_v56 }
 0xc5d   :  { %667 = vrot.lane.b32.xlu0 %v665_v58, %s2520_s30 }
 0xccf   :  { %v668_v60 = vpop.permute.xlu0 %667 }
 0xcd0   :  { %v670_v61 = vadd.f32 %v668_v60, %v660_v59 }
 0xcd2   :  { %2424 = vtanh.f32 %v670_v61 }
 0xcdc   :  { %v2425_v62 = vpop.eup %2424 }
 0xcdd   :  { %673 = vrot.lane.b32.xlu1 %v2425_v62, %s2519_s27 }
 0xd4f   :  { %v674_v63 = vpop.permute.xlu1 %673 }
 0xd50   :  { %v676_v0 = vmul.f32 %v674_v63, %v658_v56 }
 0xd52   :  { %678 = vrot.lane.b32.xlu0 %v676_v0, %s2520_s30 }
 0xdc4   :  { %v2734_v2 = vpop.permute.xlu0 %678 }
 0xdc5   :  { %2062 = vmatmul.mubr.msk.f32.vlgmr.msra.gmra.mrb[6].mxu1 %vm53_vm0, %v2734_v2 }
 0xdc6   :  { %2290 = vmatpush3.bf16.msra.mxu1 %v2586_v8  ;;  %2083 = vmatprep.mubr.msk.f32.mxu1 %vm2517_vm1, %v2518_v13 }
 0xdc7   :  { %2291 = vmatprep.subr.bf16.mxu1 %v2516_v4 }
 0xdca   :  { %2293 = vmatpush3.bf16.msra.mxu1 %v2601_v14 }
 0xdcb   :  { %2306 = vmatprep.subr.bf16.mxu1 %v2516_v4 }
 0xe98   :  { %v748_v9 = vpop.f32.mrb[6].mxu1 }
 0xe99   :  { %v752_v10 = vadd.f32 %v748_v9, %v170_v7  ;;  %v2063_v11 = vpop.f32.mrb[7].mxu1 }
 0xe9b   :  { %2426 = vtanh.f32 %v752_v10  ;;  %v753_v8 = vmul.f32 0.5, %v752_v10 }
 0xe9d   :  { %2428 = vtanh.f32 %v753_v8 }
 0xea5   :  { %v2427_v12 = vpop.eup %2426 }
 0xea6   :  { %760 = vrot.lane.b32.xlu1 %v2427_v12, %s2519_s27 }
 0xea7   :  { %v2429_v15 = vpop.eup %2428 }
 0xea8   :  { %v755_v16 = vadd.f32 1.0, %v2429_v15 }
 0xeaa   :  { %v756_v18 = vmul.f32 0.5, %v755_v16 }
 0xeac   :  { %v758_v14 = vmul.f32 %v756_v18, %v670_v61 }
 0xf18   :  { %v761_v19 = vpop.permute.xlu1 %760 }
 0xf19   :  { %v763_v20 = vmul.f32 %v761_v19, %v756_v18 }
 0xf1b   :  { %765 = vrot.lane.b32.xlu0 %v763_v20, %s2520_s30 }
 0xf8d   :  { %v766_v21 = vpop.permute.xlu0 %765 }
 0xf8e   :  { %v2748_v22 = vadd.f32 %v766_v21, %v758_v14 }
 0xf90   :  { %2430 = vtanh.f32 %v2748_v22 }
 0xf9a   :  { %v2431_v1 = vpop.eup %2430 }
 0xf9b   :  { %771 = vrot.lane.b32.xlu1 %v2431_v1, %s2519_s27 }
 0xf9f   :  { %986 = vrot.lane.b32.xlu1 %v1843_v23, %s2520_s30 }
0x100d   :  { %v772_v24 = vpop.permute.xlu1 %771 }
0x100e   :  { %v774_v25 = vmul.f32 %v772_v24, %v756_v18 }
0x1010   :  { %776 = vrot.lane.b32.xlu0 %v774_v25, %s2520_s30 }
0x1011   :  { %v987_v41 = vpop.permute.xlu1 %986 }
0x1012   :  { %v989_v42 = vsel %vm53_vm0, %v2639_v39, %v987_v41  ;;  %v175_v39 = vadd.f32 %v2628_v17, %v2686_v5  ;;  %v1844_v5 = vld [vmem:[%s2987_s7 + $0x8] sm:$0xff]  ;;  %s1818_s7 = sshll.u32 %s2521_s5, 4  ;;  %s1819_s7 = int_to_ptr.vmem [resolvable:$true] %s1818_s7 }
0x1013   :  { %s2492_s16 = scalar_lea.vmem %s1819_s7, 32  ;;  %p2497_p1 = scmp.lt.s32.totalorder %s1819_s7, %s1819_s7 }
0x1014   :  { %p2493_p0 = scmp.ne.s32.totalorder %s1819_s7, %s2492_s16  ;;  %p2498_p2 = scmp.lt.s32.totalorder %s2492_s16, %s2492_s16 }
0x1016   :  { %p2499_p3 = por %p2498_p2, %p2497_p1 }
0x1018   :  { %p2500_p4 = pnand %p2499_p3, %p2493_p0 }
0x1082   :  { %v2771_v32 = vpop.permute.xlu0 %776 }
0x1083   :  { %2073 = vmatmul.mubr.msk.f32.vlgmr.msra.gmra.mrb[12].mxu0 %vm53_vm0, %v2771_v32 }
0x1084   :  { %2296 = vmatpush3.bf16.msra.mxu0 %v2763_v29  ;;  %2102 = vmatprep.mubr.msk.f32.mxu0 %vm2517_vm1, %v2518_v13 }
0x1085   :  { %2297 = vmatprep.subr.bf16.mxu0 %v2516_v4 }
0x1088   :  { %2299 = vmatpush3.bf16.msra.mxu0 %v2776_v33 }
0x1089   :  { %2300 = vmatprep.subr.bf16.mxu0 %v2516_v4 }
0x108c   :  { %2302 = vmatpush3.bf16.msra.mxu0 %v2788_v36 }
0x108d   :  { %2303 = vmatprep.subr.bf16.mxu0 %v2516_v4 }
0x1090   :  { %2305 = vmatpush3.bf16.msra.mxu0 %v2798_v40 }
0x1091   :  { %2318 = vmatprep.subr.bf16.mxu0 %v2516_v4 }
0x1093   :  { %2103 = vmatmul.mubr.msk.f32.vlgmr.msra.gmra.mrb[14].mxu0 %vm996_vm2, %v989_v42 }
0x1094   :  { %2320 = vmatpush3.bf16.msra.mxu0 %v2763_v29  ;;  %2140 = vmatprep.mubr.msk.f32.mxu0 %vm2517_vm1, %v2518_v13 }
0x1095   :  { %2321 = vmatprep.subr.bf16.mxu0 %v2516_v4 }
0x1098   :  { %2323 = vmatpush3.bf16.msra.mxu0 %v2776_v33 }
0x1099   :  { %2324 = vmatprep.subr.bf16.mxu0 %v2516_v4 }
0x109c   :  { %2326 = vmatpush3.bf16.msra.mxu0 %v2788_v36 }
0x109d   :  { %2327 = vmatprep.subr.bf16.mxu0 %v2516_v4 }
0x10a0   :  { %2329 = vmatpush3.bf16.msra.mxu0 %v2798_v40 }
0x10a1   :  { %2342 = vmatprep.subr.bf16.mxu0 %v2516_v4 }
0x1156   :  { %v846_v43 = vpop.f32.mrb[12].mxu0 }
0x1157   :  { %v850_v44 = vadd.f32 %v846_v43, %v175_v39  ;;  %v2074_v45 = vpop.f32.mrb[13].mxu0 }
0x1159   :  { %2432 = vtanh.f32 %v850_v44  ;;  %v851_v53 = vmul.f32 0.5, %v850_v44 }
0x1163   :  { %v2433_v46 = vpop.eup %2432 }
0x1164   :  { %858 = vrot.lane.b32.xlu0 %v2433_v46, %s2519_s27 }
0x1166   :  { %v1066_v49 = vpop.f32.mrb[14].mxu0 }
0x1167   :  { %v1067_v50 = vadd.f32 %v2822_v48, %v1066_v49  ;;  %v2104_v51 = vpop.f32.mrb[15].mxu0 }
0x1169   :  { %2434 = vtanh.f32 %v1067_v50  ;;  %v1070_v55 = vmul.f32 0.5, %v1067_v50 }
0x116a   :  { %2436 = vtanh.f32 %v851_v53 }
0x116b   :  { %2438 = vtanh.f32 %v1070_v55 }
0x1173   :  { %v2435_v52 = vpop.eup %2434 }
0x1174   :  { %1081 = vrot.lane.b32.xlu1 %v2435_v52, %s2519_s27  ;;  %v2437_v54 = vpop.eup %2436 }
0x1175   :  { %v853_v56 = vadd.f32 1.0, %v2437_v54  ;;  %v2439_v60 = vpop.eup %2438 }
0x1176   :  { %v1072_v61 = vadd.f32 1.0, %v2439_v60 }
0x1177   :  { %v854_v57 = vmul.f32 0.5, %v853_v56 }
0x1178   :  { %1076 = vrot.lane.b32.xlu1 %v1844_v5, %s2520_s30  ;;  %v1073_v62 = vmul.f32 0.5, %v1072_v61 }
0x1179   :  { %v856_v7 = vmul.f32 %v854_v57, %v2748_v22 }
0x11d6   :  { %v859_v58 = vpop.permute.xlu0 %858 }
0x11d7   :  { %v861_v59 = vmul.f32 %v859_v58, %v854_v57 }
0x11d9   :  { %863 = vrot.lane.b32.xlu0 %v861_v59, %s2520_s30 }
0x11e6   :  { %v1082_v63 = vpop.permute.xlu1 %1081 }
0x11e7   :  { %v1084_v0 = vmul.f32 %v1082_v63, %v1073_v62 }
0x11e9   :  { %1086 = vrot.lane.b32.xlu0 %v1084_v0, %s2520_s30 }
0x11ea   :  { %v1077_v11 = vpop.permute.xlu1 %1076 }
0x11eb   :  { %v1079_v8 = vmul.f32 %v1077_v11, %v1073_v62 }
0x124b   :  { %v864_v9 = vpop.permute.xlu0 %863 }
0x124c   :  { %v2833_v10 = vadd.f32 %v864_v9, %v856_v7 }
0x124e   :  { %2440 = vtanh.f32 %v2833_v10 }
0x1258   :  { %v2441_v12 = vpop.eup %2440 }
0x1259   :  { %869 = vrot.lane.b32.xlu1 %v2441_v12, %s2519_s27 }
0x125b   :  { %v1087_v15 = vpop.permute.xlu0 %1086 }
0x125c   :  { %v1089_v16 = vadd.f32 %v1087_v15, %v1079_v8 }
0x125e   :  { %2442 = vtanh.f32 %v1089_v16 }
0x1268   :  { %v2443_v18 = vpop.eup %2442 }
0x1269   :  { %1092 = vrot.lane.b32.xlu0 %v2443_v18, %s2519_s27 }
0x12cb   :  { %v870_v19 = vpop.permute.xlu1 %869 }
0x12cc   :  { %v872_v20 = vmul.f32 %v870_v19, %v854_v57 }
0x12ce   :  { %874 = vrot.lane.b32.xlu1 %v872_v20, %s2520_s30 }
0x12db   :  { %v1093_v14 = vpop.permute.xlu0 %1092 }
0x12dc   :  { %v1095_v21 = vmul.f32 %v1093_v14, %v1073_v62 }
0x12de   :  { %1098 = vrot.lane.b32.xlu0 %v1095_v21, %s2519_s27 }
0x1340   :  { %v2840_v22 = vpop.permute.xlu1 %874 }
0x1341   :  { %2084 = vmatmul.mubr.msk.f32.vlgmr.msra.gmra.mrb[8].mxu1 %vm53_vm0, %v2840_v22 }
0x1342   :  { %2308 = vmatpush3.bf16.msra.mxu1 %v2763_v29  ;;  %2121 = vmatprep.mubr.msk.f32.mxu1 %vm2517_vm1, %v2518_v13 }
0x1343   :  { %2309 = vmatprep.subr.bf16.mxu1 %v2516_v4 }
0x1346   :  { %2311 = vmatpush3.bf16.msra.mxu1 %v2776_v33 }
0x1347   :  { %2312 = vmatprep.subr.bf16.mxu1 %v2516_v4 }
0x134a   :  { %2314 = vmatpush3.bf16.msra.mxu1 %v2788_v36 }
0x134b   :  { %2315 = vmatprep.subr.bf16.mxu1 %v2516_v4 }
0x134e   :  { %2317 = vmatpush3.bf16.msra.mxu1 %v2798_v40 }
0x134f   :  { %2330 = vmatprep.subr.bf16.mxu1 %v2516_v4 }
0x1350   :  { %v1099_v1 = vpop.permute.xlu0 %1098 }
0x1351   :  { %v1101_v23 = vsel %vm53_vm0, %v2688_v6, %v1099_v1  ;;  %v180_v6 = vadd.f32 %v2684_v3, %v2628_v17 }
0x1352   :  { %2122 = vmatmul.mubr.msk.f32.vlgmr.msra.gmra.mrb[10].mxu1 %vm996_vm2, %v1101_v23 }
0x1353   :  { %2332 = vmatpush3.bf16.msra.mxu1 %v2763_v29  ;;  %2159 = vmatprep.mubr.msk.f32.mxu1 %vm2517_vm1, %v2518_v13 }
0x1354   :  { %2333 = vmatprep.subr.bf16.mxu1 %v2516_v4 }
0x1357   :  { %2335 = vmatpush3.bf16.msra.mxu1 %v2776_v33 }
0x1358   :  { %2336 = vmatprep.subr.bf16.mxu1 %v2516_v4 }
0x135b   :  { %2338 = vmatpush3.bf16.msra.mxu1 %v2788_v36 }
0x135c   :  { %2339 = vmatprep.subr.bf16.mxu1 %v2516_v4 }
0x135f   :  { %2341 = vmatpush3.bf16.msra.mxu1 %v2798_v40 }
0x1360   :  { %2354 = vmatprep.subr.bf16.mxu1 %v2516_v4 }
0x1414   :  { %v944_v24 = vpop.f32.mrb[8].mxu1 }
0x1415   :  { %v2869_v25 = vadd.f32 %v944_v24, %v180_v6  ;;  %v2085_v26 = vpop.f32.mrb[9].mxu1 }
0x1425   :  { %v1171_v27 = vpop.f32.mrb[10].mxu1 }
0x1426   :  { %v1172_v30 = vadd.f32 %v2822_v48, %v1171_v27  ;;  %v2123_v31 = vpop.f32.mrb[11].mxu1 }
0x1428   :  { %2444 = vtanh.f32 %v1172_v30  ;;  %v1175_v35 = vmul.f32 0.5, %v1172_v30 }
0x142a   :  { %2446 = vtanh.f32 %v1175_v35 }
0x1432   :  { %v2445_v34 = vpop.eup %2444 }
0x1433   :  { %1182 = vrot.lane.b32.xlu1 %v2445_v34, %s2519_s27 }
0x1434   :  { %v2447_v37 = vpop.eup %2446 }
0x1435   :  { %v1177_v38 = vadd.f32 1.0, %v2447_v37 }
0x1437   :  { %v1178_v41 = vmul.f32 0.5, %v1177_v38 }
0x1439   :  { %v1180_v17 = vmul.f32 %v1178_v41, %v1089_v16 }
0x14a5   :  { %v1183_v42 = vpop.permute.xlu1 %1182 }
0x14a6   :  { %v1185_v39 = vmul.f32 %v1183_v42, %v1178_v41 }
0x14a8   :  { %1187 = vrot.lane.b32.xlu0 %v1185_v39, %s2520_s30 }
0x151a   :  { %v1188_v3 = vpop.permute.xlu0 %1187 }
0x151b   :  { %v1190_v43 = vadd.f32 %v1188_v3, %v1180_v17 }
0x151d   :  { %2448 = vtanh.f32 %v1190_v43 }
0x1527   :  { %v2449_v44 = vpop.eup %2448 }
0x1528   :  { %1193 = vrot.lane.b32.xlu1 %v2449_v44, %s2519_s27 }
0x159a   :  { %v1194_v45 = vpop.permute.xlu1 %1193 }
0x159b   :  { %v1196_v46 = vmul.f32 %v1194_v45, %v1178_v41 }
0x159d   :  { %1199 = vrot.lane.b32.xlu0 %v1196_v46, %s2519_s27 }
0x160f   :  { %v1200_v49 = vpop.permute.xlu0 %1199 }
0x1610   :  { %v1202_v50 = vsel %vm53_vm0, %v2703_v28, %v1200_v49 }
0x1611   :  { %2141 = vmatmul.mubr.msk.f32.vlgmr.msra.gmra.mrb[16].mxu0 %vm996_vm2, %v1202_v50 }
0x1612   :  { %2344 = vmatpush3.bf16.msra.mxu0 %v2763_v29  ;;  %2178 = vmatprep.mubr.msk.f32.mxu0 %vm2517_vm1, %v2518_v13 }
0x1613   :  { %2345 = vmatprep.subr.bf16.mxu0 %v2516_v4 }
0x1616   :  { %2347 = vmatpush3.bf16.msra.mxu0 %v2776_v33 }
0x1617   :  { %2348 = vmatprep.subr.bf16.mxu0 %v2516_v4 }
0x161a   :  { %2350 = vmatpush3.bf16.msra.mxu0 %v2788_v36 }
0x161b   :  { %2351 = vmatprep.subr.bf16.mxu0 %v2516_v4 }
0x161e   :  { %2353 = vmatpush3.bf16.msra.mxu0 %v2798_v40 }
0x161f   :  { %2366 = vmatprep.subr.bf16.mxu0 %v2516_v4 }
0x16e4   :  { %v1272_v28 = vpop.f32.mrb[16].mxu0 }
0x16e5   :  { %v1273_v51 = vadd.f32 %v2822_v48, %v1272_v28  ;;  %v2142_v52 = vpop.f32.mrb[17].mxu0 }
0x16e7   :  { %2450 = vtanh.f32 %v1273_v51  ;;  %v1276_v53 = vmul.f32 0.5, %v1273_v51 }
0x16e9   :  { %2452 = vtanh.f32 %v1276_v53 }
0x16f1   :  { %v2451_v5 = vpop.eup %2450 }
0x16f2   :  { %1283 = vrot.lane.b32.xlu1 %v2451_v5, %s2519_s27 }
0x16f3   :  { %v2453_v54 = vpop.eup %2452 }
0x16f4   :  { %v1278_v55 = vadd.f32 1.0, %v2453_v54 }
0x16f6   :  { %v1279_v56 = vmul.f32 0.5, %v1278_v55 }
0x16f8   :  { %v1281_v59 = vmul.f32 %v1279_v56, %v1190_v43 }
0x1764   :  { %v1284_v57 = vpop.permute.xlu1 %1283 }
0x1765   :  { %v1286_v58 = vmul.f32 %v1284_v57, %v1279_v56 }
0x1767   :  { %1288 = vrot.lane.b32.xlu0 %v1286_v58, %s2520_s30  ;;  %v949_v58 = vmul.f32 0.5, %v2869_v25 }
0x17d9   :  { %v1289_v60 = vpop.permute.xlu0 %1288 }
0x17da   :  { %v1291_v61 = vadd.f32 %v1289_v60, %v1281_v59 }
0x17dc   :  { %2454 = vtanh.f32 %v1291_v61 }
0x17e6   :  { %v2455_v62 = vpop.eup %2454 }
0x17e7   :  { %1294 = vrot.lane.b32.xlu1 %v2455_v62, %s2519_s27 }
0x1859   :  { %v1295_v63 = vpop.permute.xlu1 %1294 }
0x185a   :  { %v1297_v0 = vmul.f32 %v1295_v63, %v1279_v56 }
0x185c   :  { %1300 = vrot.lane.b32.xlu0 %v1297_v0, %s2519_s27 }
0x18ce   :  { %v1301_v7 = vpop.permute.xlu0 %1300 }
0x18cf   :  { %v1303_v9 = vsel %vm53_vm0, %v2718_v47, %v1301_v7 }
0x18d0   :  { %2160 = vmatmul.mubr.msk.f32.vlgmr.msra.gmra.mrb[12].mxu1 %vm996_vm2, %v1303_v9 }
0x18d1   :  { %2356 = vmatpush3.bf16.msra.mxu1 %v2763_v29  ;;  %2197 = vmatprep.mubr.msk.f32.mxu1 %vm2517_vm1, %v2518_v13 }
0x18d2   :  { %2357 = vmatprep.subr.bf16.mxu1 %v2516_v4 }
0x18d5   :  { %2359 = vmatpush3.bf16.msra.mxu1 %v2776_v33 }
0x18d6   :  { %2360 = vmatprep.subr.bf16.mxu1 %v2516_v4 }
0x18d9   :  { %2362 = vmatpush3.bf16.msra.mxu1 %v2788_v36 }
0x18da   :  { %2363 = vmatprep.subr.bf16.mxu1 %v2516_v4 }
0x18dd   :  { %2365 = vmatpush3.bf16.msra.mxu1 %v2798_v40 }
0x18de   :  { %2378 = vmatprep.subr.bf16.mxu1 %v2516_v4 }
0x19a3   :  { %v1373_v47 = vpop.f32.mrb[12].mxu1 }
0x19a4   :  { %v1374_v11 = vadd.f32 %v2822_v48, %v1373_v47  ;;  %v2161_v12 = vpop.f32.mrb[13].mxu1 }
0x19a6   :  { %2456 = vtanh.f32 %v1374_v11  ;;  %v1377_v15 = vmul.f32 0.5, %v1374_v11 }
0x19a8   :  { %2458 = vtanh.f32 %v1377_v15 }
0x19b0   :  { %v2457_v8 = vpop.eup %2456 }
0x19b1   :  { %1384 = vrot.lane.b32.xlu1 %v2457_v8, %s2519_s27 }
0x19b2   :  { %v2459_v16 = vpop.eup %2458 }
0x19b3   :  { %v1379_v18 = vadd.f32 1.0, %v2459_v16 }
0x19b5   :  { %v1380_v19 = vmul.f32 0.5, %v1379_v18 }
0x19b7   :  { %v1382_v21 = vmul.f32 %v1380_v19, %v1291_v61 }
0x1a23   :  { %v1385_v20 = vpop.permute.xlu1 %1384 }
0x1a24   :  { %v1387_v14 = vmul.f32 %v1385_v20, %v1380_v19 }
0x1a26   :  { %1389 = vrot.lane.b32.xlu0 %v1387_v14, %s2520_s30 }
0x1a98   :  { %v1390_v1 = vpop.permute.xlu0 %1389 }
0x1a99   :  { %v1392_v23 = vadd.f32 %v1390_v1, %v1382_v21 }
0x1a9b   :  { %2460 = vtanh.f32 %v1392_v23 }
0x1aa5   :  { %v2461_v6 = vpop.eup %2460 }
0x1aa6   :  { %1395 = vrot.lane.b32.xlu1 %v2461_v6, %s2519_s27 }
0x1b18   :  { %v1396_v24 = vpop.permute.xlu1 %1395 }
0x1b19   :  { %v1398_v26 = vmul.f32 %v1396_v24, %v1380_v19 }
0x1b1b   :  { %1401 = vrot.lane.b32.xlu0 %v1398_v26, %s2519_s27 }
0x1b8d   :  { %v1402_v27 = vpop.permute.xlu0 %1401 }
0x1b8e   :  { %v1404_v30 = vsel %vm53_vm0, %v2734_v2, %v1402_v27 }
0x1b8f   :  { %2179 = vmatmul.mubr.msk.f32.vlgmr.msra.gmra.mrb[18].mxu0 %vm996_vm2, %v1404_v30 }
0x1b90   :  { %2368 = vmatpush3.bf16.msra.mxu0 %v2763_v29  ;;  %2216 = vmatprep.mubr.msk.f32.mxu0 %vm2517_vm1, %v2518_v13 }
0x1b91   :  { %2369 = vmatprep.subr.bf16.mxu0 %v2516_v4 }
0x1b94   :  { %2371 = vmatpush3.bf16.msra.mxu0 %v2776_v33 }
0x1b95   :  { %2372 = vmatprep.subr.bf16.mxu0 %v2516_v4 }
0x1b98   :  { %2374 = vmatpush3.bf16.msra.mxu0 %v2788_v36 }
0x1b99   :  { %2375 = vmatprep.subr.bf16.mxu0 %v2516_v4 }
0x1b9c   :  { %2377 = vmatpush3.bf16.msra.mxu0 %v2798_v40 }
0x1c62   :  { %v1474_v2 = vpop.f32.mrb[18].mxu0 }
0x1c63   :  { %v1475_v31 = vadd.f32 %v2822_v48, %v1474_v2  ;;  %v2180_v34 = vpop.f32.mrb[19].mxu0 }
0x1c65   :  { %2462 = vtanh.f32 %v1475_v31  ;;  %v1478_v37 = vmul.f32 0.5, %v1475_v31 }
0x1c67   :  { %2464 = vtanh.f32 %v1478_v37 }
0x1c6f   :  { %v2463_v35 = vpop.eup %2462 }
0x1c70   :  { %1485 = vrot.lane.b32.xlu1 %v2463_v35, %s2519_s27 }
0x1c71   :  { %v2465_v38 = vpop.eup %2464 }
0x1c72   :  { %v1480_v41 = vadd.f32 1.0, %v2465_v38 }
0x1c74   :  { %v1481_v42 = vmul.f32 0.5, %v1480_v41 }
0x1c76   :  { %v1483_v3 = vmul.f32 %v1481_v42, %v1392_v23 }
0x1ce2   :  { %v1486_v39 = vpop.permute.xlu1 %1485 }
0x1ce3   :  { %v1488_v17 = vmul.f32 %v1486_v39, %v1481_v42 }
0x1ce5   :  { %1490 = vrot.lane.b32.xlu0 %v1488_v17, %s2520_s30 }
0x1d57   :  { %v1491_v43 = vpop.permute.xlu0 %1490 }
0x1d58   :  { %v1493_v44 = vadd.f32 %v1491_v43, %v1483_v3 }
0x1d5a   :  { %2466 = vtanh.f32 %v1493_v44 }
0x1d64   :  { %v2467_v45 = vpop.eup %2466 }
0x1d65   :  { %1496 = vrot.lane.b32.xlu1 %v2467_v45, %s2519_s27 }
0x1dd7   :  { %v1497_v46 = vpop.permute.xlu1 %1496 }
0x1dd8   :  { %v1499_v49 = vmul.f32 %v1497_v46, %v1481_v42 }
0x1dda   :  { %1502 = vrot.lane.b32.xlu0 %v1499_v49, %s2519_s27 }
0x1e4c   :  { %v1503_v50 = vpop.permute.xlu0 %1502 }
0x1e4d   :  { %v1505_v28 = vsel %vm53_vm0, %v2771_v32, %v1503_v50 }
0x1e4e   :  { %2198 = vmatmul.mubr.msk.f32.vlgmr.msra.gmra.mrb[14].mxu1 %vm996_vm2, %v1505_v28 }
0x1e4f   :  { %2380 = vmatpush3.bf16.msra.mxu1 %v2763_v29  ;;  %2235 = vmatprep.mubr.msk.f32.mxu1 %vm2517_vm1, %v2518_v13 }
0x1e50   :  { %2381 = vmatprep.subr.bf16.mxu1 %v2516_v4 }
0x1e53   :  { %2383 = vmatpush3.bf16.msra.mxu1 %v2776_v33 }
0x1e54   :  { %2384 = vmatprep.subr.bf16.mxu1 %v2516_v4 }
0x1e57   :  { %2386 = vmatpush3.bf16.msra.mxu1 %v2788_v36 }
0x1e58   :  { %2387 = vmatprep.subr.bf16.mxu1 %v2516_v4 }
0x1e5b   :  { %2389 = vmatpush3.bf16.msra.mxu1 %v2798_v40 }
0x1f21   :  { %v1575_v32 = vpop.f32.mrb[14].mxu1 }
0x1f22   :  { %v1576_v51 = vadd.f32 %v2822_v48, %v1575_v32  ;;  %v2199_v52 = vpop.f32.mrb[15].mxu1 }
0x1f24   :  { %2468 = vtanh.f32 %v1576_v51  ;;  %v1579_v13 = vmul.f32 0.5, %v1576_v51 }
0x1f26   :  { %2470 = vtanh.f32 %v1579_v13 }
0x1f2e   :  { %v2469_v29 = vpop.eup %2468 }
0x1f2f   :  { %1586 = vrot.lane.b32.xlu1 %v2469_v29, %s2519_s27 }
0x1f30   :  { %v2471_v5 = vpop.eup %2470 }
0x1f31   :  { %v1581_v33 = vadd.f32 1.0, %v2471_v5 }
0x1f33   :  { %v1582_v53 = vmul.f32 0.5, %v1581_v33 }
0x1f35   :  { %v1584_v4 = vmul.f32 %v1582_v53, %v1493_v44 }
0x1fa1   :  { %v1587_v54 = vpop.permute.xlu1 %1586 }
0x1fa2   :  { %v1589_v55 = vmul.f32 %v1587_v54, %v1582_v53 }
0x1fa4   :  { %1591 = vrot.lane.b32.xlu0 %v1589_v55, %s2520_s30 }
0x2016   :  { %v1592_v36 = vpop.permute.xlu0 %1591 }
0x2017   :  { %v1594_v40 = vadd.f32 %v1592_v36, %v1584_v4 }
0x2019   :  { %2472 = vtanh.f32 %v1594_v40 }
0x201a   :  { %2474 = vtanh.f32 %v2869_v25 }
0x201b   :  { %2476 = vtanh.f32 %v949_v58 }
0x2023   :  { %v2473_v56 = vpop.eup %2472 }
0x2024   :  { %1597 = vrot.lane.b32.xlu1 %v2473_v56, %s2519_s27  ;;  %v2475_v57 = vpop.eup %2474 }
0x2025   :  { %v2477_v59 = vpop.eup %2476 }
0x2026   :  { %v951_v60 = vadd.f32 1.0, %v2477_v59 }
0x2028   :  { %956 = vrot.lane.b32.xlu1 %v2475_v57, %s2519_s27  ;;  %v952_v63 = vmul.f32 0.5, %v951_v60 }
0x202a   :  { %v954_v25 = vmul.f32 %v952_v63, %v2833_v10 }
0x2096   :  { %v1598_v61 = vpop.permute.xlu1 %1597 }
0x2097   :  { %v1600_v62 = vmul.f32 %v1598_v61, %v1582_v53 }
0x2099   :  { %1603 = vrot.lane.b32.xlu0 %v1600_v62, %s2519_s27 }
0x209a   :  { %v957_v0 = vpop.permute.xlu1 %956 }
0x209b   :  { %v959_v7 = vmul.f32 %v957_v0, %v952_v63 }
0x209d   :  { %961 = vrot.lane.b32.xlu1 %v959_v7, %s2520_s30 }
0x210b   :  { %v1604_v9 = vpop.permute.xlu0 %1603 }
0x210c   :  { %v1606_v47 = vsel %vm53_vm0, %v2840_v22, %v1604_v9 }
0x210d   :  { %2217 = vmatmul.mubr.msk.f32.vlgmr.msra.gmra.mrb[20].mxu0 %vm996_vm2, %v1606_v47 }
0x210f   :  { %v962_v11 = vpop.permute.xlu1 %961 }
0x2110   :  { %v964_v12 = vadd.f32 %v962_v11, %v954_v25 }
0x2112   :  { %2478 = vtanh.f32 %v964_v12 }
0x211c   :  { %v2479_v8 = vpop.eup %2478 }
0x211d   :  { %967 = vrot.lane.b32.xlu1 %v2479_v8, %s2519_s27 }
0x218f   :  { %v968_v15 = vpop.permute.xlu1 %967 }
0x2190   :  { %v970_v16 = vmul.f32 %v968_v15, %v952_v63 }
0x2192   :  { %1703 = vrot.lane.b32.xlu1 %v970_v16, %s2520_s30 }
0x21e0   :  { %v1676_v18 = vpop.f32.mrb[20].mxu0 }
0x21e1   :  { %v1677_v19 = vadd.f32 %v2822_v48, %v1676_v18  ;;  %v2218_v20 = vpop.f32.mrb[21].mxu0 }
0x21e3   :  { %2480 = vtanh.f32 %v1677_v19  ;;  %v1680_v14 = vmul.f32 0.5, %v1677_v19 }
0x21e5   :  { %2482 = vtanh.f32 %v1680_v14 }
0x21ed   :  { %v2481_v22 = vpop.eup %2480 }
0x21ee   :  { %1687 = vrot.lane.b32.xlu0 %v2481_v22, %s2519_s27 }
0x21ef   :  { %v2483_v10 = vpop.eup %2482 }
0x21f0   :  { %v1682_v21 = vadd.f32 1.0, %v2483_v10 }
0x21f2   :  { %v1683_v1 = vmul.f32 0.5, %v1682_v21 }
0x21f4   :  { %v1685_v24 = vmul.f32 %v1683_v1, %v1594_v40 }
0x2204   :  { %v1704_v34 = vpop.permute.xlu1 %1703 }
0x2260   :  { %v1688_v23 = vpop.permute.xlu0 %1687 }
0x2261   :  { %v1690_v6 = vmul.f32 %v1688_v23, %v1683_v1 }
0x2263   :  { %1692 = vrot.lane.b32.xlu0 %v1690_v6, %s2520_s30 }
0x22d5   :  { %v1693_v26 = vpop.permute.xlu0 %1692 }
0x22d6   :  { %v1695_v27 = vadd.f32 %v1693_v26, %v1685_v24 }
0x22d8   :  { %2484 = vtanh.f32 %v1695_v27 }
0x22e2   :  { %v2485_v30 = vpop.eup %2484 }
0x22e3   :  { %1698 = vrot.lane.b32.xlu0 %v2485_v30, %s2519_s27 }
0x2355   :  { %v1699_v2 = vpop.permute.xlu0 %1698 }
0x2356   :  { %v1701_v31 = vmul.f32 %v1699_v2, %v1683_v1 }
0x2358   :  { %1707 = vrot.lane.b32.xlu0 %v1701_v31, %s2519_s27 }
0x23ca   :  { %v1708_v35 = vpop.permute.xlu0 %1707 }
0x23cb   :  { %v1710_v37 = vsel %vm53_vm0, %v1704_v34, %v1708_v35 }
0x23cc   :  { %2236 = vmatmul.mubr.msk.f32.vlgmr.msra.gmra.mrb[16].mxu1 %vm996_vm2, %v1710_v37 }
0x249f   :  { %v1780_v38 = vpop.f32.mrb[16].mxu1 }
0x24a0   :  { %v1781_v41 = vadd.f32 %v2822_v48, %v1780_v38  ;;  %v2237_v42 = vpop.f32.mrb[17].mxu1 }
0x24a2   :  { %2486 = vtanh.f32 %v1781_v41  ;;  %v1784_v17 = vmul.f32 0.5, %v1781_v41 }
0x24a4   :  { %2488 = vtanh.f32 %v1784_v17 }
0x24ac   :  { %v2487_v39 = vpop.eup %2486 }
0x24ad   :  { %1791 = vrot.lane.b32.xlu1 %v2487_v39, %s2519_s27 }
0x24ae   :  { %v2489_v3 = vpop.eup %2488 }
0x24af   :  { %v1786_v43 = vadd.f32 1.0, %v2489_v3 }
0x24b1   :  { %v1787_v44 = vmul.f32 0.5, %v1786_v43 }
0x24b3   :  { %v1789_v49 = vmul.f32 %v1787_v44, %v1695_v27 }
0x251f   :  { %v1792_v45 = vpop.permute.xlu1 %1791 }
0x2520   :  { %v1794_v46 = vmul.f32 %v1792_v45, %v1787_v44 }
0x2522   :  { %1796 = vrot.lane.b32.xlu0 %v1794_v46, %s2520_s30 }
0x2594   :  { %v1797_v50 = vpop.permute.xlu0 %1796 }
0x2595   :  { %v1799_v28 = vadd.f32 %v1797_v50, %v1789_v49 }
0x2597   :  { %2490 = vtanh.f32 %v1799_v28 }
0x25a1   :  { %v2491_v32 = vpop.eup %2490 }
0x25a2   :  { %1802 = vrot.lane.b32.xlu1 %v2491_v32, %s2519_s27 }
0x2614   :  { %v1803_v48 = vpop.permute.xlu1 %1802 }
0x2615   :  { %v1805_v51 = vmul.f32 %v1803_v48, %v1787_v44 }
0x2617   :  { %1807 = vrot.lane.b32.xlu0 %v1805_v51, %s2520_s30 }
0x2689   :  { %v1808_v52 = vpop.permute.xlu0 %1807 }
0x268a   :  { %1811 = vst.msk [vmem:[#allocation2] sm:$0x3] %vm1810_vm3, %v1808_v52 }
0x268b   :  { %2503 = shalt.err (!%p2500_p4)
}
0x268c   :  { %s2504_s27 = scalar_lea.hbm %s2988_s8, 32 }
0x268d   :  { %p2505_p5 = scmp.ne.s32.totalorder %s2988_s8, %s2504_s27  ;;  %p2508_p6 = scmp.lt.u32.totalorder %s2504_s27, %s2988_s8 }
0x268f   :  { %p2510_p7 = pnand %p2508_p6, %p2505_p5 }
0x2691   :  { %2513 = shalt.err (!%p2510_p7)
}
0x2692   :  { %1821 = dma.vmem_to_hbm [thread:$0]  %s1819_s7, 32, %s2988_s8, [#allocation3]  }
0x2693   :  { %2514 = dma.done.wait [#allocation3], 32  }
0x2694   :  { %2515 = vsyncadd [#allocation3], 4294967264 }
0x2695   :  { %1825 = vsyncpa [#allocation3], 1 }

</bundles_post_ra>
